<compile_context>
chip_gen: v7x
topology: tpu7x:2x2x1
jax: 0.10.0
libtpu: 0.0.40
codegen_flags: <defaults>
</compile_context>

<pallas_src>
import functools

import jax
import jax.numpy as jnp
from jax.experimental import pallas as pl
from jax.experimental.pallas import tpu as pltpu

EPS = 1e-5
NEG_SLOPE = 0.01

# real / padded feature sizes
D_IN, D_IN_P = 773, 896
D1, D1_P = 400, 512
D2, D2_P = 200, 256
D3, D3_P = 100, 128
D4, D4_P = 1, 128


def _bn_train(h, gamma, beta):
    # BatchNorm1d (training mode): batch mean, biased batch variance.
    mean = jnp.mean(h, axis=0, keepdims=True)
    var = jnp.mean((h - mean) ** 2, axis=0, keepdims=True)
    return (h - mean) * jax.lax.rsqrt(var + EPS) * gamma + beta


def _leaky_relu(h):
    return jnp.maximum(h, NEG_SLOPE * h)


def mlp_kernel(x_ref,
               w1_ref, g1_ref, be1_ref,
               w2_ref, g2_ref, be2_ref,
               w3_ref, g3_ref, be3_ref,
               w4_ref, g4_ref, be4_ref,
               o_ref):
    # NOTE: the Linear biases are intentionally omitted — under training-mode
    # BatchNorm a per-column constant is exactly cancelled by the batch-mean
    # subtraction, so BN(x@W + b) == BN(x@W).

    # layer 1: x (bf16) @ w1 (bf16) -> f32 accumulation on the MXU
    h = jnp.dot(x_ref[...], w1_ref[...], preferred_element_type=jnp.float32)
    h = _leaky_relu(_bn_train(h, g1_ref[...], be1_ref[...]))

    # layer 2
    h = jnp.dot(h.astype(jnp.bfloat16), w2_ref[...],
                preferred_element_type=jnp.float32)
    h = _leaky_relu(_bn_train(h, g2_ref[...], be2_ref[...]))

    # layer 3
    h = jnp.dot(h.astype(jnp.bfloat16), w3_ref[...],
                preferred_element_type=jnp.float32)
    h = _leaky_relu(_bn_train(h, g3_ref[...], be3_ref[...]))

    # layer 4 + BN + tanh
    h = jnp.dot(h.astype(jnp.bfloat16), w4_ref[...],
                preferred_element_type=jnp.float32)
    h = _bn_train(h, g4_ref[...], be4_ref[...])

    o_ref[...] = jnp.tanh(h)


def prepare_params(params):
    """Pad feature dims to multiples of 128 and cast weights to bf16 ONCE.

    Doing this at init time removes the per-call HBM padding traffic; the
    returned pytree is what model1_forward() expects.
    """
    def pad_w(w, rows, cols):
        return jnp.pad(
            w, ((0, rows - w.shape[0]), (0, cols - w.shape[1]))
        ).astype(jnp.bfloat16)

    def pad_v(v, n):
        return jnp.pad(
            v.reshape(1, -1), ((0, 0), (0, n - v.shape[0]))
        ).astype(jnp.float32)

    return {
        "w1": pad_w(params["w1"], D_IN_P, D1_P),
        "g1": pad_v(params["g1"], D1_P), "be1": pad_v(params["be1"], D1_P),
        "w2": pad_w(params["w2"], D1_P, D2_P),
        "g2": pad_v(params["g2"], D2_P), "be2": pad_v(params["be2"], D2_P),
        "w3": pad_w(params["w3"], D2_P, D3_P),
        "g3": pad_v(params["g3"], D3_P), "be3": pad_v(params["be3"], D3_P),
        "w4": pad_w(params["w4"], D3_P, D4_P),
        "g4": pad_v(params["g4"], D4_P), "be4": pad_v(params["be4"], D4_P),
    }


@functools.partial(jax.jit, static_argnames=("micro_batch",))
def model1_forward(x, padded_params, micro_batch=None):
    """x: (B, 773) float32.  padded_params: output of prepare_params().

    micro_batch=None  -> one BatchNorm group over the whole batch (exactly the
                         original Model1.forward applied to x).
    micro_batch=m     -> every consecutive group of m rows (m | B, m % 8 == 0)
                         is an independent Model1.forward() call; all groups run
                         in ONE pallas_call with grid=(B//m,), the weights
                         DMA'd once and held resident in VMEM across steps.
    Returns (B, 1) float32.
    """
    B = x.shape[0]
    mb = B if micro_batch is None else micro_batch
    assert B % mb == 0, (B, mb)
    n_steps = B // mb

    # Only the activation padding happens per call (weights pre-padded).
    xp = jnp.pad(x, ((0, 0), (0, D_IN_P - D_IN))).astype(jnp.bfloat16)
    p = padded_params

    def tiled(shape):          # tiled over the micro-batch grid axis
        return pl.BlockSpec(shape, lambda i: (i, 0))

    def resident(shape):       # same block every step -> stays in VMEM
        return pl.BlockSpec(shape, lambda i: (0, 0))

    out = pl.pallas_call(
        mlp_kernel,
        out_shape=jax.ShapeDtypeStruct((B, D4_P), jnp.float32),
        grid=(n_steps,),
        in_specs=[
            tiled((mb, D_IN_P)),
            resident((D_IN_P, D1_P)), resident((1, D1_P)), resident((1, D1_P)),
            resident((D1_P, D2_P)), resident((1, D2_P)), resident((1, D2_P)),
            resident((D2_P, D3_P)), resident((1, D3_P)), resident((1, D3_P)),
            resident((D3_P, D4_P)), resident((1, D4_P)), resident((1, D4_P)),
        ],
        out_specs=tiled((mb, D4_P)),
        compiler_params=pltpu.CompilerParams(
            dimension_semantics=("parallel",)),
    )(xp,
      p["w1"], p["g1"], p["be1"],
      p["w2"], p["g2"], p["be2"],
      p["w3"], p["g3"], p["be3"],
      p["w4"], p["g4"], p["be4"])
    return out[:, :D4]


def reference_forward(x, p, *, round_bf16):
    """Pure-JAX Model1.forward (training-mode BN, leaky_relu 0.01, biases kept).

    round_bf16=True rounds the matmul inputs through bf16 (f32 accumulation) to
    mirror the kernel's mixed precision, so the kernel can be checked at tight
    tolerance; round_bf16=False is the exact f32 module for a quantization-error
    sanity bound.
    """
    def bn(h, g, be):
        mean = jnp.mean(h, axis=0, keepdims=True)
        var = jnp.mean((h - mean) ** 2, axis=0, keepdims=True)
        return (h - mean) / jnp.sqrt(var + EPS) * g + be

    def lrelu(h):
        return jnp.maximum(h, NEG_SLOPE * h)

    def mm(a, w):
        if round_bf16:
            a = a.astype(jnp.bfloat16).astype(jnp.float32)
            w = w.astype(jnp.bfloat16).astype(jnp.float32)
        return jnp.dot(a, w, preferred_element_type=jnp.float32)

    h = lrelu(bn(mm(x, p["w1"]) + p["b1"], p["g1"], p["be1"]))
    h = lrelu(bn(mm(h, p["w2"]) + p["b2"], p["g2"], p["be2"]))
    h = lrelu(bn(mm(h, p["w3"]) + p["b3"], p["g3"], p["be3"]))
    h = bn(mm(h, p["w4"]) + p["b4"], p["g4"], p["be4"])
    return jnp.tanh(h)


def init_params(key):
    """Deterministic init; Linear weights ~ U(-1/sqrt(fan_in), 1/sqrt(fan_in))."""
    dims = [(D_IN, D1), (D1, D2), (D2, D3), (D3, D4)]
    params = {}
    keys = jax.random.split(key, 2 * len(dims))
    for i, (fi, fo) in enumerate(dims):
        bound = 1.0 / jnp.sqrt(fi)
        # stored as (in, out) so forward is x @ w + b
        params[f"w{i+1}"] = jax.random.uniform(
            keys[2 * i], (fi, fo), jnp.float32, -bound, bound)
        params[f"b{i+1}"] = jax.random.uniform(
            keys[2 * i + 1], (fo,), jnp.float32, -bound, bound)
        params[f"g{i+1}"] = jnp.ones((fo,), jnp.float32)    # BN gamma
        params[f"be{i+1}"] = jnp.zeros((fo,), jnp.float32)  # BN beta
    return params


if __name__ == "__main__":
    key = jax.random.PRNGKey(0)
    k_x, k_p = jax.random.split(key)
    params = init_params(k_p)
    padded = prepare_params(params)   # pad + bf16-cast ONCE

    # --- demo 1: many boards, fused as 4 independent 8-row micro-batches ------
    MB, N_MICRO = 8, 4
    B = MB * N_MICRO
    # chess bitboard-ish input: 773-d binary features
    x = (jax.random.uniform(k_x, (B, D_IN)) > 0.5).astype(jnp.float32)

    out = jax.block_until_ready(model1_forward(x, padded, micro_batch=MB))
    assert out.shape == (B, D4), out.shape

    # reference: each 8-row micro-batch is one Model1.forward() call
    ref_mb = jax.vmap(
        lambda xb: reference_forward(xb, params, round_bf16=True)
    )(x.reshape(N_MICRO, MB, D_IN)).reshape(B, D4)
    assert jnp.allclose(out, ref_mb, atol=2e-3, rtol=2e-3), (out, ref_mb)

    # bf16-quantization error vs. the exact f32 module stays small
    ref_f32 = jax.vmap(
        lambda xb: reference_forward(xb, params, round_bf16=False)
    )(x.reshape(N_MICRO, MB, D_IN)).reshape(B, D4)
    assert float(jnp.max(jnp.abs(out - ref_f32))) < 0.25

    # --- demo 2: single whole-batch call (original BN-over-full-batch path) ---
    x8 = x[:MB]
    out8 = jax.block_until_ready(model1_forward(x8, padded))
    ref8 = reference_forward(x8, params, round_bf16=True)
    assert out8.shape == (MB, D4), out8.shape
    assert jnp.allclose(out8, ref8, atol=2e-3, rtol=2e-3), (out8, ref8)

    print("KERNEL_OK")
</pallas_src>

<mosaic_0001>
module attributes {stable_mosaic.version = 11 : i64} {
  func.func @mlp_kernel(%arg0: i32, %arg1: memref<8x896xbf16, #tpu.memory_space<vmem>>, %arg2: memref<896x512xbf16, #tpu.memory_space<vmem>>, %arg3: memref<1x512xf32, #tpu.memory_space<vmem>>, %arg4: memref<1x512xf32, #tpu.memory_space<vmem>>, %arg5: memref<512x256xbf16, #tpu.memory_space<vmem>>, %arg6: memref<1x256xf32, #tpu.memory_space<vmem>>, %arg7: memref<1x256xf32, #tpu.memory_space<vmem>>, %arg8: memref<256x128xbf16, #tpu.memory_space<vmem>>, %arg9: memref<1x128xf32, #tpu.memory_space<vmem>>, %arg10: memref<1x128xf32, #tpu.memory_space<vmem>>, %arg11: memref<128x128xbf16, #tpu.memory_space<vmem>>, %arg12: memref<1x128xf32, #tpu.memory_space<vmem>>, %arg13: memref<1x128xf32, #tpu.memory_space<vmem>>, %arg14: memref<8x128xf32, #tpu.memory_space<vmem>>) attributes {dimension_semantics = [#tpu.dimension_semantics<parallel>], iteration_bounds = array<i64: 4>, scalar_prefetch = 0 : i64, scratch_operands = 0 : i64, tpu.core_type = #tpu.core_type<tc>, window_params = [{transform_indices = @transform_0, window_bounds = array<i64: 8, 896>}, {pipeline_mode = #tpu.pipeline_mode<synchronous>, transform_indices = @transform_1, window_bounds = array<i64: 896, 512>}, {pipeline_mode = #tpu.pipeline_mode<synchronous>, transform_indices = @transform_2, window_bounds = array<i64: 1, 512>}, {pipeline_mode = #tpu.pipeline_mode<synchronous>, transform_indices = @transform_3, window_bounds = array<i64: 1, 512>}, {pipeline_mode = #tpu.pipeline_mode<synchronous>, transform_indices = @transform_4, window_bounds = array<i64: 512, 256>}, {pipeline_mode = #tpu.pipeline_mode<synchronous>, transform_indices = @transform_5, window_bounds = array<i64: 1, 256>}, {pipeline_mode = #tpu.pipeline_mode<synchronous>, transform_indices = @transform_6, window_bounds = array<i64: 1, 256>}, {pipeline_mode = #tpu.pipeline_mode<synchronous>, transform_indices = @transform_7, window_bounds = array<i64: 256, 128>}, {pipeline_mode = #tpu.pipeline_mode<synchronous>, transform_indices = @transform_8, window_bounds = array<i64: 1, 128>}, {pipeline_mode = #tpu.pipeline_mode<synchronous>, transform_indices = @transform_9, window_bounds = array<i64: 1, 128>}, {pipeline_mode = #tpu.pipeline_mode<synchronous>, transform_indices = @transform_10, window_bounds = array<i64: 128, 128>}, {pipeline_mode = #tpu.pipeline_mode<synchronous>, transform_indices = @transform_11, window_bounds = array<i64: 1, 128>}, {pipeline_mode = #tpu.pipeline_mode<synchronous>, transform_indices = @transform_12, window_bounds = array<i64: 1, 128>}, {transform_indices = @transform_13, window_bounds = array<i64: 8, 128>}]} {
    %c0 = arith.constant 0 : index
    %c0_0 = arith.constant 0 : index
    %0 = vector.load %arg1[%c0, %c0_0] : memref<8x896xbf16, #tpu.memory_space<vmem>>, vector<8x896xbf16>
    %c0_1 = arith.constant 0 : index
    %c0_2 = arith.constant 0 : index
    %1 = vector.load %arg2[%c0_1, %c0_2] : memref<896x512xbf16, #tpu.memory_space<vmem>>, vector<896x512xbf16>
    %cst = arith.constant dense<0.000000e+00> : vector<8x512xf32>
    %2 = tpu.matmul %0, %1, %cst {dimension_numbers = #tpu.dot_dimension_numbers<[1], [0], [0], [1], [0, 0, 1, 1], [], []>} : vector<8x896xbf16>, vector<896x512xbf16>, vector<8x512xf32> -> vector<8x512xf32>
    %c0_3 = arith.constant 0 : index
    %c0_4 = arith.constant 0 : index
    %3 = vector.load %arg3[%c0_3, %c0_4] : memref<1x512xf32, #tpu.memory_space<vmem>>, vector<1x512xf32>
    %c0_5 = arith.constant 0 : index
    %c0_6 = arith.constant 0 : index
    %4 = vector.load %arg4[%c0_5, %c0_6] : memref<1x512xf32, #tpu.memory_space<vmem>>, vector<1x512xf32>
    %cst_7 = arith.constant dense<0.000000e+00> : vector<512xf32>
    %5 = vector.multi_reduction <add>, %2, %cst_7 [0] : vector<8x512xf32> to vector<512xf32>
    %6 = vector.shape_cast %5 : vector<512xf32> to vector<1x512xf32>
    %cst_8 = arith.constant 8.000000e+00 : f32
    %7 = vector.broadcast %cst_8 : f32 to vector<1x512xf32>
    %8 = arith.divf %6, %7 : vector<1x512xf32>
    %9 = vector.broadcast %8 : vector<1x512xf32> to vector<8x512xf32>
    %10 = arith.subf %2, %9 : vector<8x512xf32>
    %11 = arith.mulf %10, %10 : vector<8x512xf32>
    %cst_9 = arith.constant dense<0.000000e+00> : vector<512xf32>
    %12 = vector.multi_reduction <add>, %11, %cst_9 [0] : vector<8x512xf32> to vector<512xf32>
    %13 = vector.shape_cast %12 : vector<512xf32> to vector<1x512xf32>
    %cst_10 = arith.constant 8.000000e+00 : f32
    %14 = vector.broadcast %cst_10 : f32 to vector<1x512xf32>
    %15 = arith.divf %13, %14 : vector<1x512xf32>
    %16 = vector.broadcast %8 : vector<1x512xf32> to vector<8x512xf32>
    %17 = arith.subf %2, %16 : vector<8x512xf32>
    %cst_11 = arith.constant 9.99999974E-6 : f32
    %18 = vector.broadcast %cst_11 : f32 to vector<1x512xf32>
    %19 = arith.addf %15, %18 : vector<1x512xf32>
    %20 = math.rsqrt %19 : vector<1x512xf32>
    %21 = vector.broadcast %20 : vector<1x512xf32> to vector<8x512xf32>
    %22 = arith.mulf %17, %21 : vector<8x512xf32>
    %23 = vector.broadcast %3 : vector<1x512xf32> to vector<8x512xf32>
    %24 = arith.mulf %22, %23 : vector<8x512xf32>
    %25 = vector.broadcast %4 : vector<1x512xf32> to vector<8x512xf32>
    %26 = arith.addf %24, %25 : vector<8x512xf32>
    %cst_12 = arith.constant 0.00999999977 : f32
    %27 = vector.broadcast %cst_12 : f32 to vector<8x512xf32>
    %28 = arith.mulf %27, %26 : vector<8x512xf32>
    %29 = arith.maximumf %26, %28 : vector<8x512xf32>
    %30 = arith.truncf %29 : vector<8x512xf32> to vector<8x512xbf16>
    %c0_13 = arith.constant 0 : index
    %c0_14 = arith.constant 0 : index
    %31 = vector.load %arg5[%c0_13, %c0_14] : memref<512x256xbf16, #tpu.memory_space<vmem>>, vector<512x256xbf16>
    %cst_15 = arith.constant dense<0.000000e+00> : vector<8x256xf32>
    %32 = tpu.matmul %30, %31, %cst_15 {dimension_numbers = #tpu.dot_dimension_numbers<[1], [0], [0], [1], [0, 0, 1, 1], [], []>} : vector<8x512xbf16>, vector<512x256xbf16>, vector<8x256xf32> -> vector<8x256xf32>
    %c0_16 = arith.constant 0 : index
    %c0_17 = arith.constant 0 : index
    %33 = vector.load %arg6[%c0_16, %c0_17] : memref<1x256xf32, #tpu.memory_space<vmem>>, vector<1x256xf32>
    %c0_18 = arith.constant 0 : index
    %c0_19 = arith.constant 0 : index
    %34 = vector.load %arg7[%c0_18, %c0_19] : memref<1x256xf32, #tpu.memory_space<vmem>>, vector<1x256xf32>
    %cst_20 = arith.constant dense<0.000000e+00> : vector<256xf32>
    %35 = vector.multi_reduction <add>, %32, %cst_20 [0] : vector<8x256xf32> to vector<256xf32>
    %36 = vector.shape_cast %35 : vector<256xf32> to vector<1x256xf32>
    %cst_21 = arith.constant 8.000000e+00 : f32
    %37 = vector.broadcast %cst_21 : f32 to vector<1x256xf32>
    %38 = arith.divf %36, %37 : vector<1x256xf32>
    %39 = vector.broadcast %38 : vector<1x256xf32> to vector<8x256xf32>
    %40 = arith.subf %32, %39 : vector<8x256xf32>
    %41 = arith.mulf %40, %40 : vector<8x256xf32>
    %cst_22 = arith.constant dense<0.000000e+00> : vector<256xf32>
    %42 = vector.multi_reduction <add>, %41, %cst_22 [0] : vector<8x256xf32> to vector<256xf32>
    %43 = vector.shape_cast %42 : vector<256xf32> to vector<1x256xf32>
    %cst_23 = arith.constant 8.000000e+00 : f32
    %44 = vector.broadcast %cst_23 : f32 to vector<1x256xf32>
    %45 = arith.divf %43, %44 : vector<1x256xf32>
    %46 = vector.broadcast %38 : vector<1x256xf32> to vector<8x256xf32>
    %47 = arith.subf %32, %46 : vector<8x256xf32>
    %cst_24 = arith.constant 9.99999974E-6 : f32
    %48 = vector.broadcast %cst_24 : f32 to vector<1x256xf32>
    %49 = arith.addf %45, %48 : vector<1x256xf32>
    %50 = math.rsqrt %49 : vector<1x256xf32>
    %51 = vector.broadcast %50 : vector<1x256xf32> to vector<8x256xf32>
    %52 = arith.mulf %47, %51 : vector<8x256xf32>
    %53 = vector.broadcast %33 : vector<1x256xf32> to vector<8x256xf32>
    %54 = arith.mulf %52, %53 : vector<8x256xf32>
    %55 = vector.broadcast %34 : vector<1x256xf32> to vector<8x256xf32>
    %56 = arith.addf %54, %55 : vector<8x256xf32>
    %cst_25 = arith.constant 0.00999999977 : f32
    %57 = vector.broadcast %cst_25 : f32 to vector<8x256xf32>
    %58 = arith.mulf %57, %56 : vector<8x256xf32>
    %59 = arith.maximumf %56, %58 : vector<8x256xf32>
    %60 = arith.truncf %59 : vector<8x256xf32> to vector<8x256xbf16>
    %c0_26 = arith.constant 0 : index
    %c0_27 = arith.constant 0 : index
    %61 = vector.load %arg8[%c0_26, %c0_27] : memref<256x128xbf16, #tpu.memory_space<vmem>>, vector<256x128xbf16>
    %cst_28 = arith.constant dense<0.000000e+00> : vector<8x128xf32>
    %62 = tpu.matmul %60, %61, %cst_28 {dimension_numbers = #tpu.dot_dimension_numbers<[1], [0], [0], [1], [0, 0, 1, 1], [], []>} : vector<8x256xbf16>, vector<256x128xbf16>, vector<8x128xf32> -> vector<8x128xf32>
    %c0_29 = arith.constant 0 : index
    %c0_30 = arith.constant 0 : index
    %63 = vector.load %arg9[%c0_29, %c0_30] : memref<1x128xf32, #tpu.memory_space<vmem>>, vector<1x128xf32>
    %c0_31 = arith.constant 0 : index
    %c0_32 = arith.constant 0 : index
    %64 = vector.load %arg10[%c0_31, %c0_32] : memref<1x128xf32, #tpu.memory_space<vmem>>, vector<1x128xf32>
    %cst_33 = arith.constant dense<0.000000e+00> : vector<128xf32>
    %65 = vector.multi_reduction <add>, %62, %cst_33 [0] : vector<8x128xf32> to vector<128xf32>
    %66 = vector.shape_cast %65 : vector<128xf32> to vector<1x128xf32>
    %cst_34 = arith.constant 8.000000e+00 : f32
    %67 = vector.broadcast %cst_34 : f32 to vector<1x128xf32>
    %68 = arith.divf %66, %67 : vector<1x128xf32>
    %69 = vector.broadcast %68 : vector<1x128xf32> to vector<8x128xf32>
    %70 = arith.subf %62, %69 : vector<8x128xf32>
    %71 = arith.mulf %70, %70 : vector<8x128xf32>
    %cst_35 = arith.constant dense<0.000000e+00> : vector<128xf32>
    %72 = vector.multi_reduction <add>, %71, %cst_35 [0] : vector<8x128xf32> to vector<128xf32>
    %73 = vector.shape_cast %72 : vector<128xf32> to vector<1x128xf32>
    %cst_36 = arith.constant 8.000000e+00 : f32
    %74 = vector.broadcast %cst_36 : f32 to vector<1x128xf32>
    %75 = arith.divf %73, %74 : vector<1x128xf32>
    %76 = vector.broadcast %68 : vector<1x128xf32> to vector<8x128xf32>
    %77 = arith.subf %62, %76 : vector<8x128xf32>
    %cst_37 = arith.constant 9.99999974E-6 : f32
    %78 = vector.broadcast %cst_37 : f32 to vector<1x128xf32>
    %79 = arith.addf %75, %78 : vector<1x128xf32>
    %80 = math.rsqrt %79 : vector<1x128xf32>
    %81 = vector.broadcast %80 : vector<1x128xf32> to vector<8x128xf32>
    %82 = arith.mulf %77, %81 : vector<8x128xf32>
    %83 = vector.broadcast %63 : vector<1x128xf32> to vector<8x128xf32>
    %84 = arith.mulf %82, %83 : vector<8x128xf32>
    %85 = vector.broadcast %64 : vector<1x128xf32> to vector<8x128xf32>
    %86 = arith.addf %84, %85 : vector<8x128xf32>
    %cst_38 = arith.constant 0.00999999977 : f32
    %87 = vector.broadcast %cst_38 : f32 to vector<8x128xf32>
    %88 = arith.mulf %87, %86 : vector<8x128xf32>
    %89 = arith.maximumf %86, %88 : vector<8x128xf32>
    %90 = arith.truncf %89 : vector<8x128xf32> to vector<8x128xbf16>
    %c0_39 = arith.constant 0 : index
    %c0_40 = arith.constant 0 : index
    %91 = vector.load %arg11[%c0_39, %c0_40] : memref<128x128xbf16, #tpu.memory_space<vmem>>, vector<128x128xbf16>
    %cst_41 = arith.constant dense<0.000000e+00> : vector<8x128xf32>
    %92 = tpu.matmul %90, %91, %cst_41 {dimension_numbers = #tpu.dot_dimension_numbers<[1], [0], [0], [1], [0, 0, 1, 1], [], []>} : vector<8x128xbf16>, vector<128x128xbf16>, vector<8x128xf32> -> vector<8x128xf32>
    %c0_42 = arith.constant 0 : index
    %c0_43 = arith.constant 0 : index
    %93 = vector.load %arg12[%c0_42, %c0_43] : memref<1x128xf32, #tpu.memory_space<vmem>>, vector<1x128xf32>
    %c0_44 = arith.constant 0 : index
    %c0_45 = arith.constant 0 : index
    %94 = vector.load %arg13[%c0_44, %c0_45] : memref<1x128xf32, #tpu.memory_space<vmem>>, vector<1x128xf32>
    %cst_46 = arith.constant dense<0.000000e+00> : vector<128xf32>
    %95 = vector.multi_reduction <add>, %92, %cst_46 [0] : vector<8x128xf32> to vector<128xf32>
    %96 = vector.shape_cast %95 : vector<128xf32> to vector<1x128xf32>
    %cst_47 = arith.constant 8.000000e+00 : f32
    %97 = vector.broadcast %cst_47 : f32 to vector<1x128xf32>
    %98 = arith.divf %96, %97 : vector<1x128xf32>
    %99 = vector.broadcast %98 : vector<1x128xf32> to vector<8x128xf32>
    %100 = arith.subf %92, %99 : vector<8x128xf32>
    %101 = arith.mulf %100, %100 : vector<8x128xf32>
    %cst_48 = arith.constant dense<0.000000e+00> : vector<128xf32>
    %102 = vector.multi_reduction <add>, %101, %cst_48 [0] : vector<8x128xf32> to vector<128xf32>
    %103 = vector.shape_cast %102 : vector<128xf32> to vector<1x128xf32>
    %cst_49 = arith.constant 8.000000e+00 : f32
    %104 = vector.broadcast %cst_49 : f32 to vector<1x128xf32>
    %105 = arith.divf %103, %104 : vector<1x128xf32>
    %106 = vector.broadcast %98 : vector<1x128xf32> to vector<8x128xf32>
    %107 = arith.subf %92, %106 : vector<8x128xf32>
    %cst_50 = arith.constant 9.99999974E-6 : f32
    %108 = vector.broadcast %cst_50 : f32 to vector<1x128xf32>
    %109 = arith.addf %105, %108 : vector<1x128xf32>
    %110 = math.rsqrt %109 : vector<1x128xf32>
    %111 = vector.broadcast %110 : vector<1x128xf32> to vector<8x128xf32>
    %112 = arith.mulf %107, %111 : vector<8x128xf32>
    %113 = vector.broadcast %93 : vector<1x128xf32> to vector<8x128xf32>
    %114 = arith.mulf %112, %113 : vector<8x128xf32>
    %115 = vector.broadcast %94 : vector<1x128xf32> to vector<8x128xf32>
    %116 = arith.addf %114, %115 : vector<8x128xf32>
    %117 = math.tanh %116 : vector<8x128xf32>
    %c0_51 = arith.constant 0 : index
    %c0_52 = arith.constant 0 : index
    %118 = vector.load %arg14[%c0_51, %c0_52] : memref<8x128xf32, #tpu.memory_space<vmem>>, vector<8x128xf32>
    tpu.vector_store %arg14[%c0_51, %c0_52], %117 {strides = array<i32>} : memref<8x128xf32, #tpu.memory_space<vmem>>, vector<8x128xf32>,
    return
  }
  func.func @transform_0(%arg0: i32) -> (i32, i32) {
    %c0_i32 = arith.constant 0 : i32
    %c0_i32_0 = arith.constant 0 : i32
    return %arg0, %c0_i32 : i32, i32
  }
  func.func @transform_1(%arg0: i32) -> (i32, i32) {
    %c0_i32 = arith.constant 0 : i32
    %c0_i32_0 = arith.constant 0 : i32
    %c0_i32_1 = arith.constant 0 : i32
    return %c0_i32, %c0_i32_0 : i32, i32
  }
  func.func @transform_2(%arg0: i32) -> (i32, i32) {
    %c0_i32 = arith.constant 0 : i32
    %c0_i32_0 = arith.constant 0 : i32
    %c0_i32_1 = arith.constant 0 : i32
    return %c0_i32, %c0_i32_0 : i32, i32
  }
  func.func @transform_3(%arg0: i32) -> (i32, i32) {
    %c0_i32 = arith.constant 0 : i32
    %c0_i32_0 = arith.constant 0 : i32
    %c0_i32_1 = arith.constant 0 : i32
    return %c0_i32, %c0_i32_0 : i32, i32
  }
  func.func @transform_4(%arg0: i32) -> (i32, i32) {
    %c0_i32 = arith.constant 0 : i32
    %c0_i32_0 = arith.constant 0 : i32
    %c0_i32_1 = arith.constant 0 : i32
    return %c0_i32, %c0_i32_0 : i32, i32
  }
  func.func @transform_5(%arg0: i32) -> (i32, i32) {
    %c0_i32 = arith.constant 0 : i32
    %c0_i32_0 = arith.constant 0 : i32
    %c0_i32_1 = arith.constant 0 : i32
    return %c0_i32, %c0_i32_0 : i32, i32
  }
  func.func @transform_6(%arg0: i32) -> (i32, i32) {
    %c0_i32 = arith.constant 0 : i32
    %c0_i32_0 = arith.constant 0 : i32
    %c0_i32_1 = arith.constant 0 : i32
    return %c0_i32, %c0_i32_0 : i32, i32
  }
  func.func @transform_7(%arg0: i32) -> (i32, i32) {
    %c0_i32 = arith.constant 0 : i32
    %c0_i32_0 = arith.constant 0 : i32
    %c0_i32_1 = arith.constant 0 : i32
    return %c0_i32, %c0_i32_0 : i32, i32
  }
  func.func @transform_8(%arg0: i32) -> (i32, i32) {
    %c0_i32 = arith.constant 0 : i32
    %c0_i32_0 = arith.constant 0 : i32
    %c0_i32_1 = arith.constant 0 : i32
    return %c0_i32, %c0_i32_0 : i32, i32
  }
  func.func @transform_9(%arg0: i32) -> (i32, i32) {
    %c0_i32 = arith.constant 0 : i32
    %c0_i32_0 = arith.constant 0 : i32
    %c0_i32_1 = arith.constant 0 : i32
    return %c0_i32, %c0_i32_0 : i32, i32
  }
  func.func @transform_10(%arg0: i32) -> (i32, i32) {
    %c0_i32 = arith.constant 0 : i32
    %c0_i32_0 = arith.constant 0 : i32
    %c0_i32_1 = arith.constant 0 : i32
    return %c0_i32, %c0_i32_0 : i32, i32
  }
  func.func @transform_11(%arg0: i32) -> (i32, i32) {
    %c0_i32 = arith.constant 0 : i32
    %c0_i32_0 = arith.constant 0 : i32
    %c0_i32_1 = arith.constant 0 : i32
    return %c0_i32, %c0_i32_0 : i32, i32
  }
  func.func @transform_12(%arg0: i32) -> (i32, i32) {
    %c0_i32 = arith.constant 0 : i32
    %c0_i32_0 = arith.constant 0 : i32
    %c0_i32_1 = arith.constant 0 : i32
    return %c0_i32, %c0_i32_0 : i32, i32
  }
  func.func @transform_13(%arg0: i32) -> (i32, i32) {
    %c0_i32 = arith.constant 0 : i32
    %c0_i32_0 = arith.constant 0 : i32
    return %arg0, %c0_i32 : i32, i32
  }
}

</mosaic_0001>

<bundles_post_ra>
// kernel: model1_forward.1
= control target key start
LH: loop header
LB: loop body
LE: loop exit
PB: predicated region body
PF: predicated region fallthrough
CT: control target
= control target key end

     0   :  { %18 = vsyncpa [#allocation3], 0  ;;  %s4767_s0 = inlined_call_operand.vmem [shape: bf16[32,896], index: 0, kind: input, shape index: {}]   ;;  %s4768_s1 = inlined_call_operand.hbm [shape: bf16[896,512], index: 1, kind: input, shape index: {}]   ;;  %s4769_s2 = inlined_call_operand.vmem [shape: f32[1,512], index: 2, kind: input, shape index: {}]   ;;  %s4770_s3 = inlined_call_operand.vmem [shape: f32[1,512], index: 3, kind: input, shape index: {}]   ;;  %s4771_s4 = inlined_call_operand.vmem [shape: bf16[512,256], index: 4, kind: input, shape index: {}]   ;;  %s4772_s5 = inlined_call_operand.vmem [shape: f32[1,256], index: 5, kind: input, shape index: {}]   ;;  %s4773_s6 = inlined_call_operand.vmem [shape: f32[1,256], index: 6, kind: input, shape index: {}]   ;;  %s4774_s7 = inlined_call_operand.hbm [shape: bf16[256,128], index: 7, kind: input, shape index: {}]   ;;  %s4775_s8 = inlined_call_operand.vmem [shape: f32[1,128], index: 8, kind: input, shape index: {}]   ;;  %s4776_s9 = inlined_call_operand.vmem [shape: f32[1,128], index: 9, kind: input, shape index: {}]   ;;  %s4777_s10 = inlined_call_operand.vmem [shape: bf16[128,128], index: 10, kind: input, shape index: {}]   ;;  %s4778_s11 = inlined_call_operand.vmem [shape: f32[1,128], index: 11, kind: input, shape index: {}]   ;;  %s4779_s12 = inlined_call_operand.vmem [shape: f32[1,128], index: 12, kind: input, shape index: {}]   ;;  %s4780_s13 = inlined_call_operand.vmem [shape: f32[32,128], index: 13, kind: output, shape index: {}]  }
   0x1   :  { %19 = vsyncpa [#allocation5], 0  ;;  %s4355_s25 = smov 0  }
   0x2 LB: > { %s4276_s26 = smov [#allocation2]   ;;  %s4361_s28 = sadd.s32 4294967295, %s4274_s25   ;;  %s4274_s25 = sphi %s4355_s25, %s25_s25  }
   0x3   : > { %s346_s27 = sshll.u32 %s4276_s26, 4  ;;  %p3274_p0 = scmp.ge.s32.totalorder %s4274_s25, 1  ;;  %s347_s27 = int_to_ptr.vmem [resolvable:$true] %s346_s27 }
   0x4   : > { %p334_p1 = scmp.lt.s32.totalorder %s4274_s25, 5  ;;  %p4781_p3 = scmp.eq.s32.totalorder %s4361_s28, 0 }
   0x5   : > { %s4277_s30 = smov [#allocation4]   ;;  %s4204_s18 = scalar_lea.hbm %s4768_s1, 28672 }
   0x6   : > { %p4365_p2 = pnand %p3274_p0, %p334_p1  ;;  %s374_s14 = sshll.u32 %s4277_s30, 4  ;;  %s4378_s14 = int_to_ptr.vmem [resolvable:$true] %s374_s14 }
   0x7   : > { %p4205_p6 = scmp.ne.s32.totalorder %s4768_s1, %s4204_s18  ;;  %p4211_p10 = scmp.lt.u32.totalorder %s4204_s18, %s4768_s1 }
   0x8   : > { %s4783_s29 = scalar_select %p4365_p2, 1, 0 }
   0x9   : > { %p3694_p4 = pneg %p4365_p2 }
   0xb   : > { %p4374_p5 = pnand %p4781_p3, %p3694_p4 }
   0xd   : > { %p4206_p7 = pneg %p4374_p5 }
   0xf   : > { %p4207_p8 = pnand %p4206_p7, %p4205_p6 }
  0x11   : > { %p4208_p9 = pneg %p4207_p8 }
  0x13   : > { %p4213_p11 = pnand %p4211_p10, %p4208_p9 }
  0x15   : > { %4216 = shalt.err (!%p4213_p11)
}
  0x16   : > { %s4217_s23 = scalar_lea.vmem %s347_s27, 28672  ;;  %p4225_p1 = scmp.lt.s32.totalorder %s347_s27, %s347_s27 }
  0x17   : > { %p4218_p12 = scmp.ne.s32.totalorder %s347_s27, %s4217_s23  ;;  %p4226_p4 = scmp.lt.s32.totalorder %s4217_s23, %s4217_s23 }
  0x19   : > { %p4220_p13 = pnand %p4218_p12, %p4206_p7  ;;  %p4227_p3 = por %p4226_p4, %p4225_p1 }
  0x1b   : > { %p4221_p0 = pneg %p4220_p13 }
  0x1d   : > { %p4228_p2 = pnand %p4227_p3, %p4221_p0 }
  0x1f   : > { %4231 = shalt.err (!%p4228_p2)
}
  0x20   : > { %s4278_s24 = smov 256   ;;  %s4279_s26 = smov 16  }
  0x21   : > { %3697 = dma.hbm_to_vmem [thread:$0]  (!%p4374_p5), %s4768_s1, 28672, %s347_s27, [#allocation3], %s4278_s24, %s4278_s24, %s4279_s26  }
  0x22   : > { %s4232_s19 = scalar_lea.hbm %s4774_s7, 2048 }
  0x23   : > { %p4233_p6 = scmp.ne.s32.totalorder %s4774_s7, %s4232_s19  ;;  %p4239_p8 = scmp.lt.u32.totalorder %s4232_s19, %s4774_s7 }
  0x25   : > { %p4235_p2 = pnand %p4233_p6, %p4206_p7 }
  0x27   : > { %p4236_p3 = pneg %p4235_p2 }
  0x29   : > { %p4241_p9 = pnand %p4239_p8, %p4236_p3 }
  0x2b   : > { %4244 = shalt.err (!%p4241_p9)
}
  0x2c   : > { %s4245_s27 = scalar_lea.vmem %s4378_s14, 2048  ;;  %p4253_p13 = scmp.lt.s32.totalorder %s4378_s14, %s4378_s14 }
  0x2d   : > { %p4246_p10 = scmp.ne.s32.totalorder %s4378_s14, %s4245_s27  ;;  %p4254_p0 = scmp.lt.s32.totalorder %s4245_s27, %s4245_s27 }
  0x2f   : > { %p4248_p11 = pnand %p4246_p10, %p4206_p7  ;;  %p4255_p1 = por %p4254_p0, %p4253_p13 }
  0x31   : > { %p4249_p12 = pneg %p4248_p11 }
  0x33   : > { %p4256_p4 = pnand %p4255_p1, %p4249_p12 }
  0x35   : > { %4259 = shalt.err (!%p4256_p4)
}
  0x36   : > { %s4280_s24 = smov 64   ;;  %s4281_s26 = smov 4  }
  0x37   : > { %3700 = dma.hbm_to_vmem [thread:$0]  (!%p4374_p5), %s4774_s7, 2048, %s4378_s14, [#allocation5], %s4280_s24, %s4280_s24, %s4281_s26  }
  0x38   : > { %p4785_p6 = scmp.ne.s32.totalorder %s4783_s29, 0 }
  0x39   : > { %p4786_p7 = scmp.eq.s32.totalorder (!%p4785_p6), %s4361_s28, 0 }
  0x3a   : > { %413 = sbr.rel (%p4785_p6) target bundleno = 1418 (0x58a), region = 72 }
  0x41   : > { %4265 = dma.done.wait (%p4786_p7), [#allocation3], 28672   ;;  %p4787_p2 = pmov %p4786_p7 }
  0x43   : > { %4267 = vsyncadd (%p4787_p2), [#allocation3], 4294938624  ;;  %p4788_p3 = pmov %p4787_p2 }
  0x44   : > { %p4789_p8 = pmov %p4787_p2 }
  0x45   : > { %4269 = dma.done.wait (%p4788_p3), [#allocation5], 2048  }
  0x46   : > { %4271 = vsyncadd (%p4789_p8), [#allocation5], 4294965248  ;;  %v4282_v0 = vmov 0   ;;  %v3722_v1 = vld [vmem:[#allocation2 + $0x4] ss:$16 sps:$4 sm:$0xff]   ;;  %p460_p5 = scmp.lt.s32.totalorder %s4361_s28, 3 }
  0x47   : > { %1998 = vmatprep.mubr.bf16.mxu1 %v4282_v0  ;;  %v3724_v2 = vld [vmem:[#allocation2 + $0x604] ss:$16 sps:$4 sm:$0xff]   ;;  %1843 = vmatprep.subr.bf16.mxu0 %v3722_v1  ;;  %v3726_v3 = vld [vmem:[#allocation2] ss:$16 sps:$4 sm:$0xff]   ;;  %v3775_v34 = vld [vmem:[#allocation2 + $0xc] ss:$16 sps:$4 sm:$0xff]  }
  0x48   : > { %v3727_v4 = vld [vmem:[#allocation2 + $0x600] ss:$16 sps:$4 sm:$0xff]   ;;  %1966 = vmatprep.subr.bf16.mxu1 %v3724_v2  ;;  %v3728_v5 = vld [vmem:[#allocation2 + $0x24] ss:$16 sps:$4 sm:$0xff]   ;;  %1844 = vmatpush1.bf16.msra.mxu0 %v3726_v3  ;;  %s4791_s28 = smov (!%p460_p5, %s4361_s28), 3  ;;  %vm4284_vm0 = vmmov 0  }
  0x49   : > { %1967 = vmatpush1.bf16.msra.mxu1 %v3727_v4  ;;  %v3730_v6 = vld [vmem:[#allocation2 + $0x624] ss:$16 sps:$4 sm:$0xff]   ;;  %v3732_v7 = vld [vmem:[#allocation2 + $0x20] ss:$16 sps:$4 sm:$0xff]   ;;  %1845 = vmatprep.subr.bf16.mxu0 %v3728_v5  ;;  %s3685_s29 = smul.u32 28, %s4791_s28  ;;  %s3282_s16 = sshll.u32 %s4791_s28, 3 }
  0x4a   : > { %v3733_v8 = vld [vmem:[#allocation2 + $0x620] ss:$16 sps:$4 sm:$0xff]   ;;  %1968 = vmatprep.subr.bf16.mxu1 %v3730_v6  ;;  %v3734_v9 = vld [vmem:[#allocation2 + $0x44] ss:$16 sps:$4 sm:$0xff]   ;;  %v3773_v36 = vld [vmem:[#allocation2 + $0x8] ss:$16 sps:$4 sm:$0xff]   ;;  %s468_s15 = scalar_lea.vmem %s4780_s13, %s3282_s16 }
  0x4b   : > { %v3736_v10 = vld [vmem:[#allocation2 + $0x644] ss:$16 sps:$4 sm:$0xff]   ;;  %v3738_v11 = vld [vmem:[#allocation2 + $0x40] ss:$16 sps:$4 sm:$0xff]   ;;  %s4446_s17 = scalar_lea.vmem %s4767_s0, %s3685_s29  ;;  %v3781_v39 = vld [vmem:[#allocation2 + $0x2c] ss:$16 sps:$4 sm:$0xff]  }
  0x4c   : > { %v3739_v12 = vld [vmem:[#allocation2 + $0x640] ss:$16 sps:$4 sm:$0xff]   ;;  %1846 = vmatpush1.bf16.msra.mxu0 %v3732_v7  ;;  %v3740_v13 = vld [vmem:[#allocation2 + $0x64] ss:$16 sps:$4 sm:$0xff]   ;;  %v3772_v35 = vld [vmem:[%s4446_s17 + $0x18] ss:$0 sps:$4 sm:$0xff]  }
  0x4d   : > { %1969 = vmatpush1.bf16.msra.mxu1 %v3733_v8  ;;  %1847 = vmatprep.subr.bf16.mxu0 %v3734_v9  ;;  %v3742_v14 = vld [vmem:[#allocation2 + $0x664] ss:$16 sps:$4 sm:$0xff]   ;;  %v3744_v15 = vld [vmem:[#allocation2 + $0x60] ss:$16 sps:$4 sm:$0xff]   ;;  %v3779_v40 = vld [vmem:[#allocation2 + $0x28] ss:$16 sps:$4 sm:$0xff]  }
  0x4e   : > { %1970 = vmatprep.subr.bf16.mxu1 %v3736_v10  ;;  %v3745_v16 = vld [vmem:[#allocation2 + $0x660] ss:$16 sps:$4 sm:$0xff]   ;;  %v3746_v17 = vld [vmem:[#allocation2 + $0x84] ss:$16 sps:$4 sm:$0xff]   ;;  %v3787_v43 = vld [vmem:[#allocation2 + $0x4c] ss:$16 sps:$4 sm:$0xff]  }
  0x4f   : > { %v3748_v18 = vld [vmem:[#allocation2 + $0x684] ss:$16 sps:$4 sm:$0xff]   ;;  %v3750_v19 = vld [vmem:[#allocation2 + $0x80] ss:$16 sps:$4 sm:$0xff]   ;;  %v3785_v44 = vld [vmem:[#allocation2 + $0x48] ss:$16 sps:$4 sm:$0xff]  }
  0x50   : > { %1848 = vmatpush1.bf16.msra.mxu0 %v3738_v11  ;;  %v3751_v20 = vld [vmem:[#allocation2 + $0x680] ss:$16 sps:$4 sm:$0xff]   ;;  %v3752_v21 = vld [vmem:[#allocation2 + $0xa4] ss:$16 sps:$4 sm:$0xff]   ;;  %v3793_v47 = vld [vmem:[#allocation2 + $0x6c] ss:$16 sps:$4 sm:$0xff]  }
  0x51   : > { %1971 = vmatpush1.bf16.msra.mxu1 %v3739_v12  ;;  %1849 = vmatprep.subr.bf16.mxu0 %v3740_v13  ;;  %v3754_v22 = vld [vmem:[#allocation2 + $0x6a4] ss:$16 sps:$4 sm:$0xff]   ;;  %v3756_v23 = vld [vmem:[#allocation2 + $0xa0] ss:$16 sps:$4 sm:$0xff]   ;;  %v3791_v48 = vld [vmem:[#allocation2 + $0x68] ss:$16 sps:$4 sm:$0xff]  }
  0x52   : > { %1972 = vmatprep.subr.bf16.mxu1 %v3742_v14  ;;  %v3757_v24 = vld [vmem:[#allocation2 + $0x6a0] ss:$16 sps:$4 sm:$0xff]   ;;  %v3758_v25 = vld [vmem:[#allocation2 + $0xc4] ss:$16 sps:$4 sm:$0xff]   ;;  %v3799_v53 = vld [vmem:[#allocation2 + $0x8c] ss:$16 sps:$4 sm:$0xff]  }
  0x53   : > { %v3760_v26 = vld [vmem:[#allocation2 + $0x6c4] ss:$16 sps:$4 sm:$0xff]   ;;  %v3762_v27 = vld [vmem:[#allocation2 + $0xc0] ss:$16 sps:$4 sm:$0xff]   ;;  %v3797_v54 = vld [vmem:[#allocation2 + $0x88] ss:$16 sps:$4 sm:$0xff]  }
  0x54   : > { %1850 = vmatpush1.bf16.msra.mxu0 %v3744_v15  ;;  %v3763_v28 = vld [vmem:[#allocation2 + $0x6c0] ss:$16 sps:$4 sm:$0xff]   ;;  %v3764_v29 = vld [vmem:[#allocation2 + $0xe4] ss:$16 sps:$4 sm:$0xff]   ;;  %v3805_v57 = vld [vmem:[#allocation2 + $0xac] ss:$16 sps:$4 sm:$0xff]  }
  0x55   : > { %1973 = vmatpush1.bf16.msra.mxu1 %v3745_v16  ;;  %1851 = vmatprep.subr.bf16.mxu0 %v3746_v17  ;;  %v3766_v30 = vld [vmem:[#allocation2 + $0x6e4] ss:$16 sps:$4 sm:$0xff]   ;;  %v3768_v31 = vld [vmem:[#allocation2 + $0xe0] ss:$16 sps:$4 sm:$0xff]   ;;  %v3803_v58 = vld [vmem:[#allocation2 + $0xa8] ss:$16 sps:$4 sm:$0xff]  }
  0x56   : > { %1974 = vmatprep.subr.bf16.mxu1 %v3748_v18  ;;  %v3769_v32 = vld [vmem:[#allocation2 + $0x6e0] ss:$16 sps:$4 sm:$0xff]   ;;  %v3770_v33 = vld [vmem:[#allocation2 + $0x104] ss:$16 sps:$4 sm:$0xff]   ;;  %v3811_v61 = vld [vmem:[#allocation2 + $0xcc] ss:$16 sps:$4 sm:$0xff]  }
  0x57   : > { %v3776_v37 = vld [vmem:[#allocation2 + $0x100] ss:$16 sps:$4 sm:$0xff]   ;;  %v3777_v38 = vld [vmem:[#allocation2 + $0x124] ss:$16 sps:$4 sm:$0xff]   ;;  %v3809_v62 = vld [vmem:[#allocation2 + $0xc8] ss:$16 sps:$4 sm:$0xff]  }
  0x58   : > { %1852 = vmatpush1.bf16.msra.mxu0 %v3750_v19  ;;  %v3782_v41 = vld [vmem:[#allocation2 + $0x120] ss:$16 sps:$4 sm:$0xff]   ;;  %v3783_v42 = vld [vmem:[#allocation2 + $0x144] ss:$16 sps:$4 sm:$0xff]   ;;  %v3817_v2 = vld [vmem:[#allocation2 + $0xec] ss:$16 sps:$4 sm:$0xff]  }
  0x59   : > { %1975 = vmatpush1.bf16.msra.mxu1 %v3751_v20  ;;  %1853 = vmatprep.subr.bf16.mxu0 %v3752_v21  ;;  %v3788_v45 = vld [vmem:[#allocation2 + $0x140] ss:$16 sps:$4 sm:$0xff]   ;;  %v3789_v46 = vld [vmem:[#allocation2 + $0x164] ss:$16 sps:$4 sm:$0xff]   ;;  %v3815_v3 = vld [vmem:[#allocation2 + $0xe8] ss:$16 sps:$4 sm:$0xff]  }
  0x5a   : > { %1976 = vmatprep.subr.bf16.mxu1 %v3754_v22  ;;  %v470_v49 = vld [vmem:[%s4446_s17] sm:$0xff]  ;;  %v3826_v6 = vld [vmem:[#allocation2 + $0x10c] ss:$16 sps:$4 sm:$0xff]   ;;  %v3824_v9 = vld [vmem:[#allocation2 + $0x108] ss:$16 sps:$4 sm:$0xff]  }
  0x5b   : > { %v3794_v50 = vld [vmem:[#allocation2 + $0x160] ss:$16 sps:$4 sm:$0xff]   ;;  %v3795_v51 = vld [vmem:[#allocation2 + $0x184] ss:$16 sps:$4 sm:$0xff]   ;;  %v3284_v52 = vcombine.high %v470_v49, %v470_v49  ;;  %v4450_v7 = vcombine.low %v470_v49, %v470_v49  ;;  %v3832_v11 = vld [vmem:[#allocation2 + $0x12c] ss:$16 sps:$4 sm:$0xff]  }
  0x5c   : > { %1854 = vmatpush1.bf16.msra.mxu0 %v3756_v23  ;;  %v3800_v55 = vld [vmem:[#allocation2 + $0x180] ss:$16 sps:$4 sm:$0xff]   ;;  %v3801_v56 = vld [vmem:[#allocation2 + $0x1a4] ss:$16 sps:$4 sm:$0xff]   ;;  %v3830_v13 = vld [vmem:[#allocation2 + $0x128] ss:$16 sps:$4 sm:$0xff]  }
  0x5d   : > { %1977 = vmatpush1.bf16.msra.mxu1 %v3757_v24  ;;  %1855 = vmatprep.subr.bf16.mxu0 %v3758_v25  ;;  %v3806_v59 = vld [vmem:[#allocation2 + $0x1a0] ss:$16 sps:$4 sm:$0xff]   ;;  %v3807_v60 = vld [vmem:[#allocation2 + $0x1c4] ss:$16 sps:$4 sm:$0xff]   ;;  %v3838_v15 = vld [vmem:[#allocation2 + $0x14c] ss:$16 sps:$4 sm:$0xff]  }
  0x5e   : > { %1978 = vmatprep.subr.bf16.mxu1 %v3760_v26  ;;  %1875 = vmatprep.mubr.bf16.mxu0 %v3284_v52  ;;  %v3812_v63 = vld [vmem:[#allocation2 + $0x1c0] ss:$16 sps:$4 sm:$0xff]   ;;  %v3813_v1 = vld [vmem:[#allocation2 + $0x1e4] ss:$16 sps:$4 sm:$0xff]   ;;  %v3836_v17 = vld [vmem:[#allocation2 + $0x148] ss:$16 sps:$4 sm:$0xff]  }
  0x5f   : > { %v3818_v4 = vld [vmem:[#allocation2 + $0x1e0] ss:$16 sps:$4 sm:$0xff]   ;;  %v3823_v5 = vld [vmem:[#allocation2 + $0x204] ss:$16 sps:$4 sm:$0xff]   ;;  %v3844_v19 = vld [vmem:[#allocation2 + $0x16c] ss:$16 sps:$4 sm:$0xff]  }
  0x60   : > { %1856 = vmatpush1.bf16.msra.mxu0 %v3762_v27  ;;  %v3821_v8 = vld [vmem:[#allocation2 + $0x200] ss:$16 sps:$4 sm:$0xff]   ;;  %v3829_v10 = vld [vmem:[#allocation2 + $0x224] ss:$16 sps:$4 sm:$0xff]   ;;  %v3842_v21 = vld [vmem:[#allocation2 + $0x168] ss:$16 sps:$4 sm:$0xff]  }
  0x61   : > { %1979 = vmatpush1.bf16.msra.mxu1 %v3763_v28  ;;  %1857 = vmatprep.subr.bf16.mxu0 %v3764_v29  ;;  %v3827_v12 = vld [vmem:[#allocation2 + $0x220] ss:$16 sps:$4 sm:$0xff]   ;;  %v3835_v14 = vld [vmem:[#allocation2 + $0x244] ss:$16 sps:$4 sm:$0xff]   ;;  %v3850_v23 = vld [vmem:[#allocation2 + $0x18c] ss:$16 sps:$4 sm:$0xff]  }
  0x62   : > { %1980 = vmatprep.subr.bf16.mxu1 %v3766_v30  ;;  %v3833_v16 = vld [vmem:[#allocation2 + $0x240] ss:$16 sps:$4 sm:$0xff]   ;;  %v3841_v18 = vld [vmem:[#allocation2 + $0x264] ss:$16 sps:$4 sm:$0xff]   ;;  %v3848_v25 = vld [vmem:[#allocation2 + $0x188] ss:$16 sps:$4 sm:$0xff]  }
  0x63   : > { %v3839_v20 = vld [vmem:[#allocation2 + $0x260] ss:$16 sps:$4 sm:$0xff]   ;;  %v3847_v22 = vld [vmem:[#allocation2 + $0x284] ss:$16 sps:$4 sm:$0xff]   ;;  %v3856_v27 = vld [vmem:[#allocation2 + $0x1ac] ss:$16 sps:$4 sm:$0xff]  }
  0x64   : > { %1858 = vmatpush1.bf16.msra.mxu0 %v3768_v31  ;;  %v3845_v24 = vld [vmem:[#allocation2 + $0x280] ss:$16 sps:$4 sm:$0xff]   ;;  %v3853_v26 = vld [vmem:[#allocation2 + $0x2a4] ss:$16 sps:$4 sm:$0xff]   ;;  %v3854_v29 = vld [vmem:[#allocation2 + $0x1a8] ss:$16 sps:$4 sm:$0xff]  }
  0x65   : > { %1981 = vmatpush1.bf16.msra.mxu1 %v3769_v32  ;;  %1859 = vmatprep.subr.bf16.mxu0 %v3770_v33  ;;  %v3851_v28 = vld [vmem:[#allocation2 + $0x2a0] ss:$16 sps:$4 sm:$0xff]   ;;  %v3859_v30 = vld [vmem:[#allocation2 + $0x2c4] ss:$16 sps:$4 sm:$0xff]   ;;  %v3862_v31 = vld [vmem:[#allocation2 + $0x1cc] ss:$16 sps:$4 sm:$0xff]  }
  0x66   : > { %2007 = vmatprep.subr.bf16.mxu1 %v3775_v34  ;;  %v4454_v32 = vld [vmem:[%s4446_s17 + $0x8] sm:$0xff]  ;;  %v3857_v33 = vld [vmem:[#allocation2 + $0x2c0] ss:$16 sps:$4 sm:$0xff]  }
  0x67   : > { %v3860_v34 = vld [vmem:[#allocation2 + $0x1c8] ss:$16 sps:$4 sm:$0xff]   ;;  %v3886_v49 = vld [vmem:[#allocation2 + $0x24c] ss:$16 sps:$4 sm:$0xff]  }
  0x68   : > { %1999 = vmatmul.mubr.bf16.vlgmr.msra.gmra.mrb[0].mxu1 %v3772_v35  ;;  %1860 = vmatpush1.bf16.msra.mxu0 %v3776_v37  ;;  %v3286_v35 = vcombine.high %v4454_v32, %v4454_v32  ;;  %v3868_v37 = vld [vmem:[#allocation2 + $0x1ec] ss:$16 sps:$4 sm:$0xff]  }
  0x69   : > { %2008 = vmatpush1.bf16.msra.mxu1 %v3773_v36  ;;  %1861 = vmatprep.subr.bf16.mxu0 %v3777_v38  ;;  %v3865_v36 = vld [vmem:[#allocation2 + $0x2e4] ss:$16 sps:$4 sm:$0xff]   ;;  %v3863_v38 = vld [vmem:[#allocation2 + $0x2e0] ss:$16 sps:$4 sm:$0xff]  }
  0x6a   : > { %2009 = vmatprep.subr.bf16.mxu1 %v3781_v39  ;;  %2039 = vmatprep.mubr.bf16.mxu1 %v3284_v52  ;;  %v3866_v39 = vld [vmem:[#allocation2 + $0x1e8] ss:$16 sps:$4 sm:$0xff]   ;;  %v3889_v52 = vld [vmem:[#allocation2 + $0x364] ss:$16 sps:$4 sm:$0xff]  }
  0x6c   : > { %1862 = vmatpush1.bf16.msra.mxu0 %v3782_v41  ;;  %v3874_v41 = vld [vmem:[#allocation2 + $0x20c] ss:$16 sps:$4 sm:$0xff]  }
  0x6d   : > { %2010 = vmatpush1.bf16.msra.mxu1 %v3779_v40  ;;  %1863 = vmatprep.subr.bf16.mxu0 %v3783_v42  ;;  %v3871_v40 = vld [vmem:[#allocation2 + $0x304] ss:$16 sps:$4 sm:$0xff]   ;;  %v3869_v42 = vld [vmem:[#allocation2 + $0x300] ss:$16 sps:$4 sm:$0xff]  }
  0x6e   : > { %2011 = vmatprep.subr.bf16.mxu1 %v3787_v43  ;;  %v3872_v43 = vld [vmem:[#allocation2 + $0x208] ss:$16 sps:$4 sm:$0xff]  }
  0x70   : > { %1864 = vmatpush1.bf16.msra.mxu0 %v3788_v45  ;;  %v3880_v45 = vld [vmem:[#allocation2 + $0x22c] ss:$16 sps:$4 sm:$0xff]  }
  0x71   : > { %2012 = vmatpush1.bf16.msra.mxu1 %v3785_v44  ;;  %1865 = vmatprep.subr.bf16.mxu0 %v3789_v46  ;;  %v3877_v44 = vld [vmem:[#allocation2 + $0x324] ss:$16 sps:$4 sm:$0xff]   ;;  %v3875_v46 = vld [vmem:[#allocation2 + $0x320] ss:$16 sps:$4 sm:$0xff]  }
  0x72   : > { %2013 = vmatprep.subr.bf16.mxu1 %v3793_v47  ;;  %v3878_v47 = vld [vmem:[#allocation2 + $0x228] ss:$16 sps:$4 sm:$0xff]  }
  0x74   : > { %1866 = vmatpush1.bf16.msra.mxu0 %v3794_v50  ;;  %v3881_v50 = vld [vmem:[#allocation2 + $0x340] ss:$16 sps:$4 sm:$0xff]  }
  0x75   : > { %2014 = vmatpush1.bf16.msra.mxu1 %v3791_v48  ;;  %1867 = vmatprep.subr.bf16.mxu0 %v3795_v51  ;;  %v3883_v48 = vld [vmem:[#allocation2 + $0x344] ss:$16 sps:$4 sm:$0xff]   ;;  %v3884_v51 = vld [vmem:[#allocation2 + $0x248] ss:$16 sps:$4 sm:$0xff]  }
  0x76   : > { %2015 = vmatprep.subr.bf16.mxu1 %v3799_v53  ;;  %v3892_v53 = vld [vmem:[#allocation2 + $0x26c] ss:$16 sps:$4 sm:$0xff]  }
  0x78   : > { %1868 = vmatpush1.bf16.msra.mxu0 %v3800_v55  ;;  %v3890_v55 = vld [vmem:[#allocation2 + $0x268] ss:$16 sps:$4 sm:$0xff]  }
  0x79   : > { %2016 = vmatpush1.bf16.msra.mxu1 %v3797_v54  ;;  %1869 = vmatprep.subr.bf16.mxu0 %v3801_v56  ;;  %v3887_v54 = vld [vmem:[#allocation2 + $0x360] ss:$16 sps:$4 sm:$0xff]   ;;  %v3895_v56 = vld [vmem:[#allocation2 + $0x384] ss:$16 sps:$4 sm:$0xff]  }
  0x7a   : > { %2017 = vmatprep.subr.bf16.mxu1 %v3805_v57  ;;  %v3898_v57 = vld [vmem:[#allocation2 + $0x28c] ss:$16 sps:$4 sm:$0xff]  }
  0x7c   : > { %1870 = vmatpush1.bf16.msra.mxu0 %v3806_v59  ;;  %v3896_v59 = vld [vmem:[#allocation2 + $0x288] ss:$16 sps:$4 sm:$0xff]  }
  0x7d   : > { %2018 = vmatpush1.bf16.msra.mxu1 %v3803_v58  ;;  %1871 = vmatprep.subr.bf16.mxu0 %v3807_v60  ;;  %v3893_v58 = vld [vmem:[#allocation2 + $0x380] ss:$16 sps:$4 sm:$0xff]   ;;  %v3901_v60 = vld [vmem:[#allocation2 + $0x3a4] ss:$16 sps:$4 sm:$0xff]  }
  0x7e   : > { %2019 = vmatprep.subr.bf16.mxu1 %v3811_v61  ;;  %v3904_v61 = vld [vmem:[#allocation2 + $0x2ac] ss:$16 sps:$4 sm:$0xff]  }
  0x80   : > { %1872 = vmatpush1.bf16.msra.mxu0 %v3812_v63  ;;  %v3902_v63 = vld [vmem:[#allocation2 + $0x2a8] ss:$16 sps:$4 sm:$0xff]  }
  0x81   : > { %2020 = vmatpush1.bf16.msra.mxu1 %v3809_v62  ;;  %1873 = vmatprep.subr.bf16.mxu0 %v3813_v1  ;;  %v3899_v62 = vld [vmem:[#allocation2 + $0x3a0] ss:$16 sps:$4 sm:$0xff]   ;;  %v3907_v1 = vld [vmem:[#allocation2 + $0x3c4] ss:$16 sps:$4 sm:$0xff]  }
  0x82   : > { %2021 = vmatprep.subr.bf16.mxu1 %v3817_v2  ;;  %v3910_v2 = vld [vmem:[#allocation2 + $0x2cc] ss:$16 sps:$4 sm:$0xff]  }
  0x84   : > { %1874 = vmatpush1.bf16.msra.mxu0 %v3818_v4  ;;  %v3908_v4 = vld [vmem:[#allocation2 + $0x2c8] ss:$16 sps:$4 sm:$0xff]  }
  0x85   : > { %2022 = vmatpush1.bf16.msra.mxu1 %v3815_v3  ;;  %1884 = vmatprep.subr.bf16.mxu0 %v3823_v5  ;;  %v3905_v3 = vld [vmem:[#allocation2 + $0x3c0] ss:$16 sps:$4 sm:$0xff]   ;;  %v3913_v5 = vld [vmem:[#allocation2 + $0x3e4] ss:$16 sps:$4 sm:$0xff]  }
  0x86   : > { %2023 = vmatprep.subr.bf16.mxu1 %v3826_v6  ;;  %v3916_v6 = vld [vmem:[#allocation2 + $0x2ec] ss:$16 sps:$4 sm:$0xff]  }
  0x87   : > { %1876 = vmatmul.mubr.bf16.vlgmr.msra.gmra.mrb[0].mxu0 %v4450_v7 }
  0x88   : > { %1885 = vmatpush1.bf16.msra.mxu0 %v3821_v8  ;;  %1916 = vmatprep.mubr.bf16.mxu0 %v3286_v35  ;;  %v3914_v8 = vld [vmem:[#allocation2 + $0x2e8] ss:$16 sps:$4 sm:$0xff]  }
  0x89   : > { %2024 = vmatpush1.bf16.msra.mxu1 %v3824_v9  ;;  %1886 = vmatprep.subr.bf16.mxu0 %v3829_v10  ;;  %v3921_v9 = vld [vmem:[#allocation2 + $0x404] ss:$16 sps:$4 sm:$0xff]   ;;  %v3924_v10 = vld [vmem:[#allocation2 + $0x30c] ss:$16 sps:$4 sm:$0xff]  }
  0x8a   : > { %2025 = vmatprep.subr.bf16.mxu1 %v3832_v11  ;;  %v4461_v11 = vcombine.low %v4454_v32, %v4454_v32  ;;  %v3951_v32 = vld [vmem:[#allocation2 + $0x4a4] ss:$16 sps:$4 sm:$0xff]  }
  0x8c   : > { %1887 = vmatpush1.bf16.msra.mxu0 %v3827_v12  ;;  %v3919_v12 = vld [vmem:[#allocation2 + $0x400] ss:$16 sps:$4 sm:$0xff]  }
  0x8d   : > { %2026 = vmatpush1.bf16.msra.mxu1 %v3830_v13  ;;  %1888 = vmatprep.subr.bf16.mxu0 %v3835_v14  ;;  %v3922_v13 = vld [vmem:[#allocation2 + $0x308] ss:$16 sps:$4 sm:$0xff]   ;;  %v3927_v14 = vld [vmem:[#allocation2 + $0x424] ss:$16 sps:$4 sm:$0xff]  }
  0x8e   : > { %2027 = vmatprep.subr.bf16.mxu1 %v3838_v15  ;;  %v3930_v15 = vld [vmem:[#allocation2 + $0x32c] ss:$16 sps:$4 sm:$0xff]  }
  0x90   : > { %1889 = vmatpush1.bf16.msra.mxu0 %v3833_v16  ;;  %v4464_v16 = vld [vmem:[%s4446_s17 + $0x10] sm:$0xff] }
  0x91   : > { %2028 = vmatpush1.bf16.msra.mxu1 %v3836_v17  ;;  %1890 = vmatprep.subr.bf16.mxu0 %v3841_v18  ;;  %v4468_v17 = vcombine.high %v4464_v16, %v4464_v16  ;;  %v3925_v18 = vld [vmem:[#allocation2 + $0x420] ss:$16 sps:$4 sm:$0xff]  }
  0x92   : > { %2029 = vmatprep.subr.bf16.mxu1 %v3844_v19  ;;  %v3928_v19 = vld [vmem:[#allocation2 + $0x328] ss:$16 sps:$4 sm:$0xff]  }
  0x94   : > { %1891 = vmatpush1.bf16.msra.mxu0 %v3839_v20  ;;  %v3933_v20 = vld [vmem:[#allocation2 + $0x444] ss:$16 sps:$4 sm:$0xff]  }
  0x95   : > { %2030 = vmatpush1.bf16.msra.mxu1 %v3842_v21  ;;  %1892 = vmatprep.subr.bf16.mxu0 %v3847_v22  ;;  %v3936_v21 = vld [vmem:[#allocation2 + $0x34c] ss:$16 sps:$4 sm:$0xff]   ;;  %v3931_v22 = vld [vmem:[#allocation2 + $0x440] ss:$16 sps:$4 sm:$0xff]  }
  0x96   : > { %2031 = vmatprep.subr.bf16.mxu1 %v3850_v23  ;;  %v3934_v23 = vld [vmem:[#allocation2 + $0x348] ss:$16 sps:$4 sm:$0xff]  }
  0x98   : > { %1893 = vmatpush1.bf16.msra.mxu0 %v3845_v24  ;;  %v3939_v24 = vld [vmem:[#allocation2 + $0x464] ss:$16 sps:$4 sm:$0xff]  }
  0x99   : > { %2032 = vmatpush1.bf16.msra.mxu1 %v3848_v25  ;;  %1894 = vmatprep.subr.bf16.mxu0 %v3853_v26  ;;  %v3942_v25 = vld [vmem:[#allocation2 + $0x36c] ss:$16 sps:$4 sm:$0xff]   ;;  %v3937_v26 = vld [vmem:[#allocation2 + $0x460] ss:$16 sps:$4 sm:$0xff]  }
  0x9a   : > { %2033 = vmatprep.subr.bf16.mxu1 %v3856_v27  ;;  %v3940_v27 = vld [vmem:[#allocation2 + $0x368] ss:$16 sps:$4 sm:$0xff]  }
  0x9c   : > { %1895 = vmatpush1.bf16.msra.mxu0 %v3851_v28  ;;  %v3945_v28 = vld [vmem:[#allocation2 + $0x484] ss:$16 sps:$4 sm:$0xff]  }
  0x9d   : > { %2034 = vmatpush1.bf16.msra.mxu1 %v3854_v29  ;;  %1896 = vmatprep.subr.bf16.mxu0 %v3859_v30  ;;  %v3948_v29 = vld [vmem:[#allocation2 + $0x38c] ss:$16 sps:$4 sm:$0xff]   ;;  %v3943_v30 = vld [vmem:[#allocation2 + $0x480] ss:$16 sps:$4 sm:$0xff]  }
  0x9e   : > { %2035 = vmatprep.subr.bf16.mxu1 %v3862_v31  ;;  %v3946_v31 = vld [vmem:[#allocation2 + $0x388] ss:$16 sps:$4 sm:$0xff]  }
  0xa0   : > { %1897 = vmatpush1.bf16.msra.mxu0 %v3857_v33  ;;  %v3954_v33 = vld [vmem:[#allocation2 + $0x3ac] ss:$16 sps:$4 sm:$0xff]  }
  0xa1   : > { %2036 = vmatpush1.bf16.msra.mxu1 %v3860_v34  ;;  %1898 = vmatprep.subr.bf16.mxu0 %v3865_v36  ;;  %v3949_v34 = vld [vmem:[#allocation2 + $0x4a0] ss:$16 sps:$4 sm:$0xff]   ;;  %v3957_v36 = vld [vmem:[#allocation2 + $0x4c4] ss:$16 sps:$4 sm:$0xff]  }
  0xa2   : > { %2037 = vmatprep.subr.bf16.mxu1 %v3868_v37  ;;  %v3960_v37 = vld [vmem:[#allocation2 + $0x3cc] ss:$16 sps:$4 sm:$0xff]  }
  0xa4   : > { %1899 = vmatpush1.bf16.msra.mxu0 %v3863_v38  ;;  %v3955_v38 = vld [vmem:[#allocation2 + $0x4c0] ss:$16 sps:$4 sm:$0xff]  }
  0xa5   : > { %2038 = vmatpush1.bf16.msra.mxu1 %v3866_v39  ;;  %1900 = vmatprep.subr.bf16.mxu0 %v3871_v40  ;;  %v3958_v39 = vld [vmem:[#allocation2 + $0x3c8] ss:$16 sps:$4 sm:$0xff]   ;;  %v3963_v40 = vld [vmem:[#allocation2 + $0x4e4] ss:$16 sps:$4 sm:$0xff]  }
  0xa6   : > { %2048 = vmatprep.subr.bf16.mxu1 %v3874_v41  ;;  %v3966_v41 = vld [vmem:[#allocation2 + $0x3ec] ss:$16 sps:$4 sm:$0xff]  }
  0xa8   : > { %2040 = vmatmul.mubr.bf16.vlgmr.msra.gmra.mrb[4].mxu1 %v4450_v7  ;;  %1901 = vmatpush1.bf16.msra.mxu0 %v3869_v42  ;;  %v3911_v7 = vld [vmem:[#allocation2 + $0x3e0] ss:$16 sps:$4 sm:$0xff]  }
  0xa9   : > { %2049 = vmatpush1.bf16.msra.mxu1 %v3872_v43  ;;  %1902 = vmatprep.subr.bf16.mxu0 %v3877_v44  ;;  %v3961_v42 = vld [vmem:[#allocation2 + $0x4e0] ss:$16 sps:$4 sm:$0xff]   ;;  %v3964_v43 = vld [vmem:[#allocation2 + $0x3e8] ss:$16 sps:$4 sm:$0xff]   ;;  %v3969_v44 = vld [vmem:[#allocation2 + $0x504] ss:$16 sps:$4 sm:$0xff]  }
  0xaa   : > { %2050 = vmatprep.subr.bf16.mxu1 %v3880_v45  ;;  %2080 = vmatprep.mubr.bf16.mxu1 %v3286_v35  ;;  %v3952_v35 = vld [vmem:[#allocation2 + $0x3a8] ss:$16 sps:$4 sm:$0xff]   ;;  %v3972_v45 = vld [vmem:[#allocation2 + $0x40c] ss:$16 sps:$4 sm:$0xff]  }
  0xac   : > { %1903 = vmatpush1.bf16.msra.mxu0 %v3875_v46  ;;  %v3967_v46 = vld [vmem:[#allocation2 + $0x500] ss:$16 sps:$4 sm:$0xff]  }
  0xad   : > { %2051 = vmatpush1.bf16.msra.mxu1 %v3878_v47  ;;  %1904 = vmatprep.subr.bf16.mxu0 %v3883_v48  ;;  %v3970_v47 = vld [vmem:[#allocation2 + $0x408] ss:$16 sps:$4 sm:$0xff]   ;;  %v3975_v48 = vld [vmem:[#allocation2 + $0x524] ss:$16 sps:$4 sm:$0xff]  }
  0xae   : > { %2052 = vmatprep.subr.bf16.mxu1 %v3886_v49  ;;  %v3978_v49 = vld [vmem:[#allocation2 + $0x42c] ss:$16 sps:$4 sm:$0xff]  }
  0xb0   : > { %1905 = vmatpush1.bf16.msra.mxu0 %v3881_v50  ;;  %v3973_v50 = vld [vmem:[#allocation2 + $0x520] ss:$16 sps:$4 sm:$0xff]  }
  0xb1   : > { %2053 = vmatpush1.bf16.msra.mxu1 %v3884_v51  ;;  %1906 = vmatprep.subr.bf16.mxu0 %v3889_v52  ;;  %v3976_v51 = vld [vmem:[#allocation2 + $0x428] ss:$16 sps:$4 sm:$0xff]   ;;  %v3981_v52 = vld [vmem:[#allocation2 + $0x544] ss:$16 sps:$4 sm:$0xff]  }
  0xb2   : > { %2054 = vmatprep.subr.bf16.mxu1 %v3892_v53  ;;  %v3984_v53 = vld [vmem:[#allocation2 + $0x44c] ss:$16 sps:$4 sm:$0xff]  }
  0xb4   : > { %1907 = vmatpush1.bf16.msra.mxu0 %v3887_v54  ;;  %v3979_v54 = vld [vmem:[#allocation2 + $0x540] ss:$16 sps:$4 sm:$0xff]  }
  0xb5   : > { %2055 = vmatpush1.bf16.msra.mxu1 %v3890_v55  ;;  %1908 = vmatprep.subr.bf16.mxu0 %v3895_v56  ;;  %v3982_v55 = vld [vmem:[#allocation2 + $0x448] ss:$16 sps:$4 sm:$0xff]   ;;  %v3987_v56 = vld [vmem:[#allocation2 + $0x564] ss:$16 sps:$4 sm:$0xff]  }
  0xb6   : > { %2056 = vmatprep.subr.bf16.mxu1 %v3898_v57  ;;  %v3990_v57 = vld [vmem:[#allocation2 + $0x46c] ss:$16 sps:$4 sm:$0xff]  }
  0xb8   : > { %1909 = vmatpush1.bf16.msra.mxu0 %v3893_v58  ;;  %v3985_v58 = vld [vmem:[#allocation2 + $0x560] ss:$16 sps:$4 sm:$0xff]  }
  0xb9   : > { %2057 = vmatpush1.bf16.msra.mxu1 %v3896_v59  ;;  %1910 = vmatprep.subr.bf16.mxu0 %v3901_v60  ;;  %v3988_v59 = vld [vmem:[#allocation2 + $0x468] ss:$16 sps:$4 sm:$0xff]   ;;  %v3993_v60 = vld [vmem:[#allocation2 + $0x584] ss:$16 sps:$4 sm:$0xff]  }
  0xba   : > { %2058 = vmatprep.subr.bf16.mxu1 %v3904_v61  ;;  %v3996_v61 = vld [vmem:[#allocation2 + $0x48c] ss:$16 sps:$4 sm:$0xff]  }
  0xbc   : > { %1911 = vmatpush1.bf16.msra.mxu0 %v3899_v62  ;;  %v3991_v62 = vld [vmem:[#allocation2 + $0x580] ss:$16 sps:$4 sm:$0xff]  }
  0xbd   : > { %2059 = vmatpush1.bf16.msra.mxu1 %v3902_v63  ;;  %1912 = vmatprep.subr.bf16.mxu0 %v3907_v1  ;;  %v3994_v63 = vld [vmem:[#allocation2 + $0x488] ss:$16 sps:$4 sm:$0xff]   ;;  %v3999_v1 = vld [vmem:[#allocation2 + $0x5a4] ss:$16 sps:$4 sm:$0xff]  }
  0xbe   : > { %2060 = vmatprep.subr.bf16.mxu1 %v3910_v2  ;;  %v4002_v2 = vld [vmem:[#allocation2 + $0x4ac] ss:$16 sps:$4 sm:$0xff]  }
  0xc0   : > { %1913 = vmatpush1.bf16.msra.mxu0 %v3905_v3  ;;  %v3997_v3 = vld [vmem:[#allocation2 + $0x5a0] ss:$16 sps:$4 sm:$0xff]  }
  0xc1   : > { %2061 = vmatpush1.bf16.msra.mxu1 %v3908_v4  ;;  %1914 = vmatprep.subr.bf16.mxu0 %v3913_v5  ;;  %v4000_v4 = vld [vmem:[#allocation2 + $0x4a8] ss:$16 sps:$4 sm:$0xff]   ;;  %v4005_v5 = vld [vmem:[#allocation2 + $0x5c4] ss:$16 sps:$4 sm:$0xff]  }
  0xc2   : > { %2062 = vmatprep.subr.bf16.mxu1 %v3916_v6  ;;  %v4008_v6 = vld [vmem:[#allocation2 + $0x4cc] ss:$16 sps:$4 sm:$0xff]  }
  0xc4   : > { %1915 = vmatpush1.bf16.msra.mxu0 %v3911_v7  ;;  %v4003_v7 = vld [vmem:[#allocation2 + $0x5c0] ss:$16 sps:$4 sm:$0xff]  }
  0xc5   : > { %2063 = vmatpush1.bf16.msra.mxu1 %v3914_v8  ;;  %1925 = vmatprep.subr.bf16.mxu0 %v3921_v9  ;;  %v4006_v8 = vld [vmem:[#allocation2 + $0x4c8] ss:$16 sps:$4 sm:$0xff]   ;;  %v4011_v9 = vld [vmem:[#allocation2 + $0x5e4] ss:$16 sps:$4 sm:$0xff]  }
  0xc6   : > { %2064 = vmatprep.subr.bf16.mxu1 %v3924_v10  ;;  %v4014_v10 = vld [vmem:[#allocation2 + $0x4ec] ss:$16 sps:$4 sm:$0xff]  }
  0xc7   : > { %1917 = vmatmul.mubr.bf16.vlgmr.msra.gmra.mrb[0].mxu0 %v4461_v11 }
  0xc8   : > { %1926 = vmatpush1.bf16.msra.mxu0 %v3919_v12  ;;  %1957 = vmatprep.mubr.bf16.mxu0 %v4468_v17  ;;  %v4012_v12 = vld [vmem:[#allocation2 + $0x4e8] ss:$16 sps:$4 sm:$0xff]  }
  0xc9   : > { %2065 = vmatpush1.bf16.msra.mxu1 %v3922_v13  ;;  %1927 = vmatprep.subr.bf16.mxu0 %v3927_v14  ;;  %v4019_v13 = vld [vmem:[#allocation2 + $0x50c] ss:$16 sps:$4 sm:$0xff]  }
  0xca   : > { %2066 = vmatprep.subr.bf16.mxu1 %v3930_v15  ;;  %v4067_v14 = vld [vmem:[%s4771_s4 + $0x4] ss:$8 sps:$4 sm:$0xff]   ;;  %v3287_v15 = vcombine.low %v4464_v16, %v4464_v16 }
  0xcb   : > { %v4028_v16 = vld [vmem:[#allocation2 + $0x56c] ss:$16 sps:$4 sm:$0xff]  }
  0xcc   : > { %1928 = vmatpush1.bf16.msra.mxu0 %v3925_v18  ;;  %v4065_v18 = vld [vmem:[%s4771_s4] ss:$8 sps:$4 sm:$0xff]  }
  0xcd   : > { %2067 = vmatpush1.bf16.msra.mxu1 %v3928_v19  ;;  %1929 = vmatprep.subr.bf16.mxu0 %v3933_v20  ;;  %v4022_v19 = vld [vmem:[#allocation2 + $0x52c] ss:$16 sps:$4 sm:$0xff]   ;;  %v4020_v20 = vld [vmem:[#allocation2 + $0x528] ss:$16 sps:$4 sm:$0xff]  }
  0xce   : > { %2068 = vmatprep.subr.bf16.mxu1 %v3936_v21  ;;  %v4025_v21 = vld [vmem:[#allocation2 + $0x54c] ss:$16 sps:$4 sm:$0xff]  }
  0xd0   : > { %1930 = vmatpush1.bf16.msra.mxu0 %v3931_v22  ;;  %v4023_v22 = vld [vmem:[#allocation2 + $0x548] ss:$16 sps:$4 sm:$0xff]  }
  0xd1   : > { %2069 = vmatpush1.bf16.msra.mxu1 %v3934_v23  ;;  %1931 = vmatprep.subr.bf16.mxu0 %v3939_v24  ;;  %v4026_v23 = vld [vmem:[#allocation2 + $0x568] ss:$16 sps:$4 sm:$0xff]   ;;  %v4031_v24 = vld [vmem:[#allocation2 + $0x58c] ss:$16 sps:$4 sm:$0xff]  }
  0xd2   : > { %2070 = vmatprep.subr.bf16.mxu1 %v3942_v25  ;;  %v4029_v25 = vld [vmem:[#allocation2 + $0x588] ss:$16 sps:$4 sm:$0xff]  }
  0xd4   : > { %1932 = vmatpush1.bf16.msra.mxu0 %v3937_v26  ;;  %v4034_v26 = vld [vmem:[#allocation2 + $0x5ac] ss:$16 sps:$4 sm:$0xff]  }
  0xd5   : > { %2071 = vmatpush1.bf16.msra.mxu1 %v3940_v27  ;;  %1933 = vmatprep.subr.bf16.mxu0 %v3945_v28  ;;  %v4032_v27 = vld [vmem:[#allocation2 + $0x5a8] ss:$16 sps:$4 sm:$0xff]   ;;  %v4037_v28 = vld [vmem:[#allocation2 + $0x5cc] ss:$16 sps:$4 sm:$0xff]  }
  0xd6   : > { %2072 = vmatprep.subr.bf16.mxu1 %v3948_v29  ;;  %v4035_v29 = vld [vmem:[#allocation2 + $0x5c8] ss:$16 sps:$4 sm:$0xff]  }
  0xd8   : > { %1934 = vmatpush1.bf16.msra.mxu0 %v3943_v30  ;;  %v4040_v30 = vld [vmem:[#allocation2 + $0x5ec] ss:$16 sps:$4 sm:$0xff]  }
  0xd9   : > { %2073 = vmatpush1.bf16.msra.mxu1 %v3946_v31  ;;  %1935 = vmatprep.subr.bf16.mxu0 %v3951_v32  ;;  %v4038_v31 = vld [vmem:[#allocation2 + $0x5e8] ss:$16 sps:$4 sm:$0xff]   ;;  %v4043_v32 = vld [vmem:[#allocation2 + $0x60c] ss:$16 sps:$4 sm:$0xff]  }
  0xda   : > { %2074 = vmatprep.subr.bf16.mxu1 %v3954_v33  ;;  %v4041_v33 = vld [vmem:[#allocation2 + $0x608] ss:$16 sps:$4 sm:$0xff]  }
  0xdc   : > { %1936 = vmatpush1.bf16.msra.mxu0 %v3949_v34  ;;  %v4046_v34 = vld [vmem:[#allocation2 + $0x62c] ss:$16 sps:$4 sm:$0xff]  }
  0xdd   : > { %2075 = vmatpush1.bf16.msra.mxu1 %v3952_v35  ;;  %1937 = vmatprep.subr.bf16.mxu0 %v3957_v36  ;;  %v4044_v35 = vld [vmem:[#allocation2 + $0x628] ss:$16 sps:$4 sm:$0xff]   ;;  %v4049_v36 = vld [vmem:[#allocation2 + $0x64c] ss:$16 sps:$4 sm:$0xff]  }
  0xde   : > { %2076 = vmatprep.subr.bf16.mxu1 %v3960_v37  ;;  %v4047_v37 = vld [vmem:[#allocation2 + $0x648] ss:$16 sps:$4 sm:$0xff]  }
  0xe0   : > { %1938 = vmatpush1.bf16.msra.mxu0 %v3955_v38  ;;  %v4052_v38 = vld [vmem:[#allocation2 + $0x66c] ss:$16 sps:$4 sm:$0xff]  }
  0xe1   : > { %2077 = vmatpush1.bf16.msra.mxu1 %v3958_v39  ;;  %1939 = vmatprep.subr.bf16.mxu0 %v3963_v40  ;;  %v4050_v39 = vld [vmem:[#allocation2 + $0x668] ss:$16 sps:$4 sm:$0xff]   ;;  %v4055_v40 = vld [vmem:[#allocation2 + $0x68c] ss:$16 sps:$4 sm:$0xff]  }
  0xe2   : > { %2078 = vmatprep.subr.bf16.mxu1 %v3966_v41  ;;  %v4053_v41 = vld [vmem:[#allocation2 + $0x688] ss:$16 sps:$4 sm:$0xff]  }
  0xe4   : > { %1940 = vmatpush1.bf16.msra.mxu0 %v3961_v42  ;;  %v4058_v42 = vld [vmem:[#allocation2 + $0x6ac] ss:$16 sps:$4 sm:$0xff]  }
  0xe5   : > { %2079 = vmatpush1.bf16.msra.mxu1 %v3964_v43  ;;  %1941 = vmatprep.subr.bf16.mxu0 %v3969_v44  ;;  %v4056_v43 = vld [vmem:[#allocation2 + $0x6a8] ss:$16 sps:$4 sm:$0xff]   ;;  %v4061_v44 = vld [vmem:[#allocation2 + $0x6cc] ss:$16 sps:$4 sm:$0xff]  }
  0xe6   : > { %2089 = vmatprep.subr.bf16.mxu1 %v3972_v45 }
  0xe8   : > { %2081 = vmatmul.mubr.bf16.vlgmr.msra.gmra.mrb[4].mxu1 %v4461_v11  ;;  %1942 = vmatpush1.bf16.msra.mxu0 %v3967_v46  ;;  %v4009_v11 = vld [vmem:[#allocation2 + $0x5e0] ss:$16 sps:$4 sm:$0xff]  }
  0xe9   : > { %2090 = vmatpush1.bf16.msra.mxu1 %v3970_v47  ;;  %1943 = vmatprep.subr.bf16.mxu0 %v3975_v48  ;;  %v4059_v47 = vld [vmem:[#allocation2 + $0x6c8] ss:$16 sps:$4 sm:$0xff]  }
  0xea   : > { %2091 = vmatprep.subr.bf16.mxu1 %v3978_v49  ;;  %2121 = vmatprep.mubr.bf16.mxu1 %v4468_v17  ;;  %v4017_v17 = vld [vmem:[#allocation2 + $0x508] ss:$16 sps:$4 sm:$0xff]   ;;  %v4064_v49 = vld [vmem:[#allocation2 + $0x6ec] ss:$16 sps:$4 sm:$0xff]  }
  0xec   : > { %1944 = vmatpush1.bf16.msra.mxu0 %v3973_v50  ;;  %v4062_v50 = vld [vmem:[#allocation2 + $0x6e8] ss:$16 sps:$4 sm:$0xff]  }
  0xed   : > { %2092 = vmatpush1.bf16.msra.mxu1 %v3976_v51  ;;  %1945 = vmatprep.subr.bf16.mxu0 %v3981_v52  ;;  %v4203_v51 = vld [vmem:[%s4446_s17 + $0x18] ss:$0 sps:$4 sm:$0xff]   ;;  %v4070_v52 = vld [vmem:[%s4771_s4 + $0x14] ss:$8 sps:$4 sm:$0xff]  }
  0xee   : > { %2093 = vmatprep.subr.bf16.mxu1 %v3984_v53  ;;  %v4068_v53 = vld [vmem:[%s4771_s4 + $0x10] ss:$8 sps:$4 sm:$0xff]  }
  0xf0   : > { %1946 = vmatpush1.bf16.msra.mxu0 %v3979_v54  ;;  %v4073_v54 = vld [vmem:[%s4771_s4 + $0x24] ss:$8 sps:$4 sm:$0xff]  }
  0xf1   : > { %2094 = vmatpush1.bf16.msra.mxu1 %v3982_v55  ;;  %1947 = vmatprep.subr.bf16.mxu0 %v3987_v56  ;;  %v4071_v55 = vld [vmem:[%s4771_s4 + $0x20] ss:$8 sps:$4 sm:$0xff]   ;;  %v4076_v56 = vld [vmem:[%s4771_s4 + $0x34] ss:$8 sps:$4 sm:$0xff]  }
  0xf2   : > { %2095 = vmatprep.subr.bf16.mxu1 %v3990_v57  ;;  %v4074_v57 = vld [vmem:[%s4771_s4 + $0x30] ss:$8 sps:$4 sm:$0xff]  }
  0xf4   : > { %1948 = vmatpush1.bf16.msra.mxu0 %v3985_v58  ;;  %v4079_v58 = vld [vmem:[%s4771_s4 + $0x44] ss:$8 sps:$4 sm:$0xff]  }
  0xf5   : > { %2096 = vmatpush1.bf16.msra.mxu1 %v3988_v59  ;;  %1949 = vmatprep.subr.bf16.mxu0 %v3993_v60  ;;  %v4077_v59 = vld [vmem:[%s4771_s4 + $0x40] ss:$8 sps:$4 sm:$0xff]   ;;  %v4082_v60 = vld [vmem:[%s4771_s4 + $0x54] ss:$8 sps:$4 sm:$0xff]  }
  0xf6   : > { %2097 = vmatprep.subr.bf16.mxu1 %v3996_v61  ;;  %v4080_v61 = vld [vmem:[%s4771_s4 + $0x50] ss:$8 sps:$4 sm:$0xff]  }
  0xf8   : > { %1950 = vmatpush1.bf16.msra.mxu0 %v3991_v62  ;;  %v4085_v62 = vld [vmem:[%s4771_s4 + $0x64] ss:$8 sps:$4 sm:$0xff]  }
  0xf9   : > { %2098 = vmatpush1.bf16.msra.mxu1 %v3994_v63  ;;  %1951 = vmatprep.subr.bf16.mxu0 %v3999_v1  ;;  %v4083_v63 = vld [vmem:[%s4771_s4 + $0x60] ss:$8 sps:$4 sm:$0xff]   ;;  %v4088_v1 = vld [vmem:[%s4771_s4 + $0x74] ss:$8 sps:$4 sm:$0xff]  }
  0xfa   : > { %2099 = vmatprep.subr.bf16.mxu1 %v4002_v2  ;;  %v4086_v2 = vld [vmem:[%s4771_s4 + $0x70] ss:$8 sps:$4 sm:$0xff]  }
  0xfc   : > { %1952 = vmatpush1.bf16.msra.mxu0 %v3997_v3  ;;  %v4091_v3 = vld [vmem:[%s4771_s4 + $0x84] ss:$8 sps:$4 sm:$0xff]  }
  0xfd   : > { %2100 = vmatpush1.bf16.msra.mxu1 %v4000_v4  ;;  %1953 = vmatprep.subr.bf16.mxu0 %v4005_v5  ;;  %v4089_v4 = vld [vmem:[%s4771_s4 + $0x80] ss:$8 sps:$4 sm:$0xff]   ;;  %v4094_v5 = vld [vmem:[%s4771_s4 + $0x94] ss:$8 sps:$4 sm:$0xff]  }
  0xfe   : > { %2101 = vmatprep.subr.bf16.mxu1 %v4008_v6  ;;  %v4092_v6 = vld [vmem:[%s4771_s4 + $0x90] ss:$8 sps:$4 sm:$0xff]  }
 0x100   : > { %1954 = vmatpush1.bf16.msra.mxu0 %v4003_v7  ;;  %v4097_v7 = vld [vmem:[%s4771_s4 + $0xa4] ss:$8 sps:$4 sm:$0xff]  }
 0x101   : > { %2102 = vmatpush1.bf16.msra.mxu1 %v4006_v8  ;;  %1955 = vmatprep.subr.bf16.mxu0 %v4011_v9  ;;  %v4095_v8 = vld [vmem:[%s4771_s4 + $0xa0] ss:$8 sps:$4 sm:$0xff]   ;;  %v4100_v9 = vld [vmem:[%s4771_s4 + $0xb4] ss:$8 sps:$4 sm:$0xff]  }
 0x102   : > { %2103 = vmatprep.subr.bf16.mxu1 %v4014_v10  ;;  %v4098_v10 = vld [vmem:[%s4771_s4 + $0xb0] ss:$8 sps:$4 sm:$0xff]  }
 0x104   : > { %1956 = vmatpush1.bf16.msra.mxu0 %v4009_v11  ;;  %v4103_v11 = vld [vmem:[%s4771_s4 + $0xc4] ss:$8 sps:$4 sm:$0xff]  }
 0x105   : > { %2104 = vmatpush1.bf16.msra.mxu1 %v4012_v12  ;;  %2696 = vmatprep.subr.bf16.mxu0 %v4067_v14  ;;  %v4101_v12 = vld [vmem:[%s4771_s4 + $0xc0] ss:$8 sps:$4 sm:$0xff]   ;;  %v4104_v14 = vld [vmem:[%s4771_s4 + $0xd0] ss:$8 sps:$4 sm:$0xff]  }
 0x106   : > { %2105 = vmatprep.subr.bf16.mxu1 %v4019_v13  ;;  %v4106_v13 = vld [vmem:[%s4771_s4 + $0xd4] ss:$8 sps:$4 sm:$0xff]  }
 0x107   : > { %1958 = vmatmul.mubr.bf16.vlgmr.msra.gmra.mrb[0].mxu0 %v3287_v15 }
 0x108   : > { %2697 = vmatpush1.bf16.msra.mxu0 %v4065_v18  ;;  %v4112_v18 = vld [vmem:[%s4771_s4 + $0xf4] ss:$8 sps:$4 sm:$0xff]  }
 0x109   : > { %2106 = vmatpush1.bf16.msra.mxu1 %v4017_v17  ;;  %2698 = vmatprep.subr.bf16.mxu0 %v4070_v52  ;;  %v4109_v17 = vld [vmem:[%s4771_s4 + $0xe4] ss:$8 sps:$4 sm:$0xff]  }
 0x10a   : > { %2107 = vmatprep.subr.bf16.mxu1 %v4022_v19  ;;  %v4110_v19 = vld [vmem:[%s4771_s4 + $0xf0] ss:$8 sps:$4 sm:$0xff]  }
 0x10c   : > { %2699 = vmatpush1.bf16.msra.mxu0 %v4068_v53 }
 0x10d   : > { %2108 = vmatpush1.bf16.msra.mxu1 %v4020_v20  ;;  %2700 = vmatprep.subr.bf16.mxu0 %v4073_v54  ;;  %v4115_v20 = vld [vmem:[%s4771_s4 + $0x104] ss:$8 sps:$4 sm:$0xff]  }
 0x10e   : > { %2109 = vmatprep.subr.bf16.mxu1 %v4025_v21  ;;  %v2251_v21 = vlaneseq }
 0x110   : > { %2701 = vmatpush1.bf16.msra.mxu0 %v4071_v55 }
 0x111   : > { %2110 = vmatpush1.bf16.msra.mxu1 %v4023_v22  ;;  %2702 = vmatprep.subr.bf16.mxu0 %v4076_v56  ;;  %v4581_v22 = vshrl.u32 %v2251_v21, 7 }
 0x112   : > { %2111 = vmatprep.subr.bf16.mxu1 %v4028_v16 }
 0x113   : > { %v2261_v16 = vsub.s32 2, %v4581_v22 }
 0x114   : > { %2703 = vmatpush1.bf16.msra.mxu0 %v4074_v57 }
 0x115   : > { %2112 = vmatpush1.bf16.msra.mxu1 %v4026_v23  ;;  %2704 = vmatprep.subr.bf16.mxu0 %v4079_v58  ;;  %v4587_v23 = vld [vmem:[%s4769_s2] sm:$0xf] }
 0x116   : > { %2113 = vmatprep.subr.bf16.mxu1 %v4031_v24  ;;  %v4592_v24 = vld [vmem:[%s4770_s3] sm:$0xf] }
 0x118   : > { %2705 = vmatpush1.bf16.msra.mxu0 %v4077_v59 }
 0x119   : > { %2114 = vmatpush1.bf16.msra.mxu1 %v4029_v25  ;;  %2706 = vmatprep.subr.bf16.mxu0 %v4082_v60  ;;  %v4595_v25 = vrot.slane %v4587_v23, %v2261_v16 }
 0x11a   : > { %2115 = vmatprep.subr.bf16.mxu1 %v4034_v26  ;;  %v4598_v26 = vrot.slane %v4592_v24, %v2261_v16 }
 0x11c   : > { %2707 = vmatpush1.bf16.msra.mxu0 %v4080_v61 }
 0x11d   : > { %2116 = vmatpush1.bf16.msra.mxu1 %v4032_v27  ;;  %2708 = vmatprep.subr.bf16.mxu0 %v4085_v62 }
 0x11e   : > { %2117 = vmatprep.subr.bf16.mxu1 %v4037_v28 }
 0x120   : > { %2709 = vmatpush1.bf16.msra.mxu0 %v4083_v63 }
 0x121   : > { %2118 = vmatpush1.bf16.msra.mxu1 %v4035_v29  ;;  %2710 = vmatprep.subr.bf16.mxu0 %v4088_v1 }
 0x122   : > { %2119 = vmatprep.subr.bf16.mxu1 %v4040_v30 }
 0x124   : > { %2711 = vmatpush1.bf16.msra.mxu0 %v4086_v2 }
 0x125   : > { %2120 = vmatpush1.bf16.msra.mxu1 %v4038_v31  ;;  %2712 = vmatprep.subr.bf16.mxu0 %v4091_v3  ;;  %v4603_v3 = vsub.s32 0, %v4581_v22 }
 0x126   : > { %2130 = vmatprep.subr.bf16.mxu1 %v4043_v32 }
 0x128   : > { %2122 = vmatmul.mubr.bf16.vlgmr.msra.gmra.mrb[4].mxu1 %v3287_v15  ;;  %2713 = vmatpush1.bf16.msra.mxu0 %v4089_v4  ;;  %v4107_v15 = vld [vmem:[%s4771_s4 + $0xe0] ss:$8 sps:$4 sm:$0xff]   ;;  %v4606_v4 = vsub.s32 1, %v4581_v22 }
 0x129   : > { %2131 = vmatpush1.bf16.msra.mxu1 %v4041_v33  ;;  %2162 = vmatprep.mubr.bf16.mxu1 %v4282_v0 }
 0x12a   : > { %2132 = vmatprep.subr.bf16.mxu1 %v4046_v34  ;;  %2714 = vmatprep.subr.bf16.mxu0 %v4094_v5  ;;  %v2254_v5 = vrot.slane %v4587_v23, %v4603_v3 }
 0x12c   : > { %2715 = vmatpush1.bf16.msra.mxu0 %v4092_v6 }
 0x12d   : > { %2133 = vmatpush1.bf16.msra.mxu1 %v4044_v35  ;;  %2716 = vmatprep.subr.bf16.mxu0 %v4097_v7  ;;  %v2258_v7 = vrot.slane %v4587_v23, %v4606_v4 }
 0x12e   : > { %2134 = vmatprep.subr.bf16.mxu1 %v4049_v36 }
 0x130   : > { %2717 = vmatpush1.bf16.msra.mxu0 %v4095_v8 }
 0x131   : > { %2135 = vmatpush1.bf16.msra.mxu1 %v4047_v37  ;;  %2718 = vmatprep.subr.bf16.mxu0 %v4100_v9 }
 0x132   : > { %2136 = vmatprep.subr.bf16.mxu1 %v4052_v38 }
 0x134   : > { %2719 = vmatpush1.bf16.msra.mxu0 %v4098_v10  ;;  %v2279_v10 = vrot.slane %v4592_v24, %v4603_v3 }
 0x135   : > { %2137 = vmatpush1.bf16.msra.mxu1 %v4050_v39  ;;  %2720 = vmatprep.subr.bf16.mxu0 %v4103_v11 }
 0x136   : > { %2138 = vmatprep.subr.bf16.mxu1 %v4055_v40 }
 0x138   : > { %2721 = vmatpush1.bf16.msra.mxu0 %v4101_v12  ;;  %v2283_v12 = vrot.slane %v4592_v24, %v4606_v4 }
 0x139   : > { %2139 = vmatpush1.bf16.msra.mxu1 %v4053_v41  ;;  %2722 = vmatprep.subr.bf16.mxu0 %v4106_v13 }
 0x13a   : > { %2140 = vmatprep.subr.bf16.mxu1 %v4058_v42 }
 0x13b   : > { %v4483_v0 = vpop.f32.mrb[0].mxu1 }
 0x13c   : > { %v4485_v45 = vpop.f32.mrb[1].mxu1  ;;  %2723 = vmatpush1.bf16.msra.mxu0 %v4104_v14 }
 0x13d   : > { %v2004_v46 = vpop.f32.mrb[2].mxu1  ;;  %2141 = vmatpush1.bf16.msra.mxu1 %v4056_v43  ;;  %2724 = vmatprep.subr.bf16.mxu0 %v4109_v17 }
 0x13e   : > { %v2005_v48 = vpop.f32.mrb[3].mxu1  ;;  %2142 = vmatprep.subr.bf16.mxu1 %v4061_v44 }
 0x140   : > { %2725 = vmatpush1.bf16.msra.mxu0 %v4107_v15 }
 0x141   : > { %2143 = vmatpush1.bf16.msra.mxu1 %v4059_v47  ;;  %2726 = vmatprep.subr.bf16.mxu0 %v4112_v18 }
 0x142   : > { %2144 = vmatprep.subr.bf16.mxu1 %v4064_v49 }
 0x144   : > { %2727 = vmatpush1.bf16.msra.mxu0 %v4110_v19 }
 0x145   : > { %2145 = vmatpush1.bf16.msra.mxu1 %v4062_v50  ;;  %2737 = vmatprep.subr.bf16.mxu0 %v4115_v20 }
 0x148   : > { %2163 = vmatmul.mubr.bf16.vlgmr.msra.gmra.mrb[4].mxu1 %v4203_v51 }
 0x1da   : > { %v1959_v27 = vpop.f32.mrb[0].mxu0 }
 0x1db   : > { %v3659_v28 = vadd.f32 %v4483_v0, %v1959_v27  ;;  %v1961_v29 = vpop.f32.mrb[1].mxu0  ;;  %v4113_v27 = vld [vmem:[%s4771_s4 + $0x100] ss:$8 sps:$4 sm:$0xff]  }
 0x1dc   : > { %v3660_v30 = vadd.f32 %v4485_v45, %v1961_v29  ;;  %v1963_v31 = vpop.f32.mrb[2].mxu0  ;;  %v4118_v29 = vld [vmem:[%s4771_s4 + $0x114] ss:$8 sps:$4 sm:$0xff]  }
 0x1dd   : > { %v2173_v32 = vrot.slane %v3659_v28, 4  ;;  %v1964_v33 = vpop.f32.mrb[3].mxu0 }
 0x1de   : > { %v2179_v34 = vrot.slane %v3660_v30, 4 }
 0x1df   : > { %v2174_v35 = vadd.f32 %v3659_v28, %v2173_v32  ;;  %v4121_v32 = vld [vmem:[%s4771_s4 + $0x124] ss:$8 sps:$4 sm:$0xff]  }
 0x1e0   : > { %v2180_v36 = vadd.f32 %v3660_v30, %v2179_v34 }
 0x1e1   : > { %v2175_v37 = vrot.slane %v2174_v35, 2 }
 0x1e2   : > { %v2181_v38 = vrot.slane %v2180_v36, 2 }
 0x1e3   : > { %v2176_v39 = vadd.f32 %v2175_v37, %v2174_v35 }
 0x1e4   : > { %v2182_v40 = vadd.f32 %v2181_v38, %v2180_v36 }
 0x1e5   : > { %v2177_v41 = vrot.slane %v2176_v39, 1 }
 0x1e6   : > { %v2183_v42 = vrot.slane %v2182_v40, 1 }
 0x1e7   : > { %v2178_v43 = vadd.f32 %v2177_v41, %v2176_v39  ;;  %v4119_v39 = vld [vmem:[%s4771_s4 + $0x120] ss:$8 sps:$4 sm:$0xff]   ;;  %v4124_v41 = vld [vmem:[%s4771_s4 + $0x134] ss:$8 sps:$4 sm:$0xff]  }
 0x1e8   : > { %v2184_v44 = vadd.f32 %v2183_v42, %v2182_v40 }
 0x1e9   : > { %v2198_v46 = vmul.f32 0.125, %v2178_v43 }
 0x1ea   : > { %v2199_v47 = vmul.f32 0.125, %v2184_v44 }
 0x1eb   : > { %v2202_v0 = vsub.f32 %v3659_v28, %v2198_v46  ;;  %v4122_v46 = vld [vmem:[%s4771_s4 + $0x130] ss:$8 sps:$4 sm:$0xff]  }
 0x1ec   : > { %v2203_v48 = vsub.f32 %v3660_v30, %v2199_v47  ;;  %v4116_v30 = vld [vmem:[%s4771_s4 + $0x110] ss:$8 sps:$4 sm:$0xff]  }
 0x1ed   : > { %v2206_v49 = vmul.f32 %v2202_v0, %v2202_v0 }
 0x1ee   : > { %v2207_v45 = vmul.f32 %v2203_v48, %v2203_v48 }
 0x1ef   : > { %v2210_v50 = vrot.slane %v2206_v49, 4 }
 0x1f0   : > { %v2216_v51 = vrot.slane %v2207_v45, 4 }
 0x1f1   : > { %v2211_v52 = vadd.f32 %v2210_v50, %v2206_v49  ;;  %v4125_v50 = vld [vmem:[%s4771_s4 + $0x140] ss:$8 sps:$4 sm:$0xff]  }
 0x1f2   : > { %v2217_v53 = vadd.f32 %v2216_v51, %v2207_v45 }
 0x1f3   : > { %v2212_v54 = vrot.slane %v2211_v52, 2 }
 0x1f4   : > { %v2218_v55 = vrot.slane %v2217_v53, 2 }
 0x1f5   : > { %v2213_v56 = vadd.f32 %v2212_v54, %v2211_v52  ;;  %v4130_v52 = vld [vmem:[%s4771_s4 + $0x154] ss:$8 sps:$4 sm:$0xff]  }
 0x1f6   : > { %v2219_v57 = vadd.f32 %v2218_v55, %v2217_v53 }
 0x1f7   : > { %v2214_v58 = vrot.slane %v2213_v56, 1 }
 0x1f8   : > { %v2220_v59 = vrot.slane %v2219_v57, 1 }
 0x1f9   : > { %v2215_v60 = vadd.f32 %v2214_v58, %v2213_v56  ;;  %v4128_v56 = vld [vmem:[%s4771_s4 + $0x150] ss:$8 sps:$4 sm:$0xff]   ;;  %v4133_v58 = vld [vmem:[%s4771_s4 + $0x164] ss:$8 sps:$4 sm:$0xff]  }
 0x1fa   : > { %v2221_v61 = vadd.f32 %v2220_v59, %v2219_v57 }
 0x1fb   : > { %v2234_v62 = vmul.f32 0.125, %v2215_v60 }
 0x1fc   : > { %v2235_v63 = vmul.f32 0.125, %v2221_v61 }
 0x1fd   : > { %v2238_v1 = vadd.f32 1e-05, %v2234_v62  ;;  %v4131_v62 = vld [vmem:[%s4771_s4 + $0x160] ss:$8 sps:$4 sm:$0xff]  }
 0x1fe   : > { %v2239_v2 = vadd.f32 1e-05, %v2235_v63 }
 0x1ff   : > { %4185 = vrsqrt.f32 %v2238_v1  ;;  %v4136_v1 = vld [vmem:[%s4771_s4 + $0x174] ss:$8 sps:$4 sm:$0xff]  }
 0x200   : > { %4187 = vrsqrt.f32 %v2239_v2 }
 0x209   : > { %v4186_v6 = vpop.eup %4185 }
 0x20a   : > { %v4188_v8 = vpop.eup %4187  ;;  %v2246_v9 = vmul.f32 %v4186_v6, %v2202_v0  ;;  %v4127_v0 = vld [vmem:[%s4771_s4 + $0x144] ss:$8 sps:$4 sm:$0xff]  }
 0x20b   : > { %v2247_v11 = vmul.f32 %v4188_v8, %v2203_v48 }
 0x20c   : > { %v2271_v13 = vmul.f32 %v2254_v5, %v2246_v9  ;;  %v4139_v9 = vld [vmem:[%s4771_s4 + $0x184] ss:$8 sps:$4 sm:$0xff]  }
 0x20d   : > { %v2272_v14 = vmul.f32 %v2258_v7, %v2247_v11  ;;  %v4134_v7 = vld [vmem:[%s4771_s4 + $0x170] ss:$8 sps:$4 sm:$0xff]  }
 0x20e   : > { %v2296_v15 = vadd.f32 %v2279_v10, %v2271_v13  ;;  %v4137_v13 = vld [vmem:[%s4771_s4 + $0x180] ss:$8 sps:$4 sm:$0xff]  }
 0x20f   : > { %v2297_v17 = vadd.f32 %v2283_v12, %v2272_v14 }
 0x210   : > { %v2300_v18 = vmul.f32 0.01, %v2296_v15 }
 0x211   : > { %v2301_v19 = vmul.f32 0.01, %v2297_v17 }
 0x212   : > { %v2304_v20 = vmax.f32 %v2296_v15, %v2300_v18  ;;  %v4142_v15 = vld [vmem:[%s4771_s4 + $0x194] ss:$8 sps:$4 sm:$0xff]  }
 0x213   : > { %v2305_v21 = vmax.f32 %v2297_v17, %v2301_v19 }
 0x214   : > { %v2308_v28 = vpack.c.bf16 %v2304_v20, %v2304_v20  ;;  %v4140_v20 = vld [vmem:[%s4771_s4 + $0x190] ss:$8 sps:$4 sm:$0xff]  }
 0x215   : > { %v2309_v16 = vpack.c.bf16 %v2305_v21, %v2305_v21 }
 0x217   : > { %2728 = vmatprep.mubr.bf16.mxu0 %v2309_v16  ;;  %v4145_v16 = vld [vmem:[%s4771_s4 + $0x1a4] ss:$8 sps:$4 sm:$0xff]  }
 0x218   : > { %2729 = vmatmul.mubr.bf16.vlgmr.msra.gmra.mrb[4].mxu0 %v2308_v28 }
 0x219   : > { %2738 = vmatpush1.bf16.msra.mxu0 %v4113_v27 }
 0x21a   : > { %2739 = vmatprep.subr.bf16.mxu0 %v4118_v29  ;;  %v4143_v29 = vld [vmem:[%s4771_s4 + $0x1a0] ss:$8 sps:$4 sm:$0xff]  }
 0x21b   : > { %v2164_v31 = vpop.f32.mrb[4].mxu1 }
 0x21c   : > { %v2185_v33 = vrot.slane %v2164_v31, 4  ;;  %v2166_v34 = vpop.f32.mrb[5].mxu1 }
 0x21d   : > { %v2191_v35 = vrot.slane %v2166_v34, 4  ;;  %v2168_v36 = vpop.f32.mrb[6].mxu1  ;;  %2740 = vmatpush1.bf16.msra.mxu0 %v4116_v30  ;;  %v4148_v30 = vld [vmem:[%s4771_s4 + $0x1b4] ss:$8 sps:$4 sm:$0xff]  }
 0x21e   : > { %v2186_v37 = vadd.f32 %v2185_v33, %v2164_v31  ;;  %v2169_v38 = vpop.f32.mrb[7].mxu1  ;;  %2741 = vmatprep.subr.bf16.mxu0 %v4121_v32  ;;  %v4151_v32 = vld [vmem:[%s4771_s4 + $0x1c4] ss:$8 sps:$4 sm:$0xff]   ;;  %v2265_v33 = vsub.s32 3, %v4581_v22  ;;  %v4152_v22 = vld [vmem:[%s4771_s4 + $0x1d0] ss:$8 sps:$4 sm:$0xff]  }
 0x21f   : > { %v2192_v40 = vadd.f32 %v2191_v35, %v2166_v34  ;;  %v4154_v35 = vld [vmem:[%s4771_s4 + $0x1d4] ss:$8 sps:$4 sm:$0xff]  }
 0x220   : > { %v2187_v42 = vrot.slane %v2186_v37, 2 }
 0x221   : > { %v2193_v43 = vrot.slane %v2192_v40, 2  ;;  %2742 = vmatpush1.bf16.msra.mxu0 %v4119_v39 }
 0x222   : > { %v2188_v44 = vadd.f32 %v2187_v42, %v2186_v37  ;;  %2743 = vmatprep.subr.bf16.mxu0 %v4124_v41  ;;  %v2266_v37 = vrot.slane %v4587_v23, %v2265_v33  ;;  %v2291_v41 = vrot.slane %v4592_v24, %v2265_v33  ;;  %v4160_v24 = vld [vmem:[%s4771_s4 + $0x1f4] ss:$8 sps:$4 sm:$0xff]  }
 0x223   : > { %v2194_v47 = vadd.f32 %v2193_v43, %v2192_v40  ;;  %v4157_v43 = vld [vmem:[%s4771_s4 + $0x1e4] ss:$8 sps:$4 sm:$0xff]  }
 0x224   : > { %v2189_v48 = vrot.slane %v2188_v44, 1 }
 0x225   : > { %v2195_v49 = vrot.slane %v2194_v47, 1  ;;  %2744 = vmatpush1.bf16.msra.mxu0 %v4122_v46  ;;  %v4155_v46 = vld [vmem:[%s4771_s4 + $0x1e0] ss:$8 sps:$4 sm:$0xff]  }
 0x226   : > { %v2190_v45 = vadd.f32 %v2189_v48, %v2188_v44  ;;  %2745 = vmatprep.subr.bf16.mxu0 %v4127_v0  ;;  %v4158_v48 = vld [vmem:[%s4771_s4 + $0x1f0] ss:$8 sps:$4 sm:$0xff]  }
 0x227   : > { %v2196_v51 = vadd.f32 %v2195_v49, %v2194_v47 }
 0x228   : > { %v2200_v53 = vmul.f32 0.125, %v2190_v45 }
 0x229   : > { %v2201_v54 = vmul.f32 0.125, %v2196_v51  ;;  %2746 = vmatpush1.bf16.msra.mxu0 %v4125_v50  ;;  %v4161_v51 = vld [vmem:[#allocation4 + $0x40] sm:$0xff]  }
 0x22a   : > { %v2204_v55 = vsub.f32 %v2164_v31, %v2200_v53  ;;  %2747 = vmatprep.subr.bf16.mxu0 %v4130_v52  ;;  %v4146_v31 = vld [vmem:[%s4771_s4 + $0x1b0] ss:$8 sps:$4 sm:$0xff]   ;;  %v4162_v52 = vld [vmem:[#allocation4] sm:$0xff]   ;;  %3608 = vmatprep.subr.bf16.mxu1 %v4161_v51  ;;  %v4163_v53 = vld [vmem:[#allocation4 + $0x48] sm:$0xff]  }
 0x22b   : > { %v2205_v57 = vsub.f32 %v2166_v34, %v2201_v54  ;;  %v4149_v34 = vld [vmem:[%s4771_s4 + $0x1c0] ss:$8 sps:$4 sm:$0xff]   ;;  %3609 = vmatpush3.bf16.msra.mxu1 %v4162_v52 }
 0x22c   : > { %v2208_v59 = vmul.f32 %v2204_v55, %v2204_v55  ;;  %v4164_v54 = vld [vmem:[#allocation4 + $0x8] sm:$0xff]   ;;  %3610 = vmatprep.subr.bf16.mxu1 %v4163_v53 }
 0x22d   : > { %v2209_v60 = vmul.f32 %v2205_v57, %v2205_v57  ;;  %2748 = vmatpush1.bf16.msra.mxu0 %v4128_v56  ;;  %v4166_v56 = vld [vmem:[#allocation4 + $0x10] sm:$0xff]  }
 0x22e   : > { %v2222_v61 = vrot.slane %v2208_v59, 4  ;;  %2749 = vmatprep.subr.bf16.mxu0 %v4133_v58  ;;  %v4168_v58 = vld [vmem:[#allocation4 + $0x18] sm:$0xff]  }
 0x22f   : > { %v2228_v63 = vrot.slane %v2209_v60, 4  ;;  %3611 = vmatpush3.bf16.msra.mxu1 %v4164_v54 }
 0x230   : > { %v2223_v2 = vadd.f32 %v2222_v61, %v2208_v59  ;;  %v4169_v59 = vld [vmem:[#allocation4 + $0x60] sm:$0xff]   ;;  %v4171_v61 = vld [vmem:[#allocation4 + $0x68] sm:$0xff]  }
 0x231   : > { %v2229_v5 = vadd.f32 %v2228_v63, %v2209_v60  ;;  %2750 = vmatpush1.bf16.msra.mxu0 %v4131_v62  ;;  %v4170_v60 = vld [vmem:[#allocation4 + $0x20] sm:$0xff]   ;;  %v4172_v62 = vld [vmem:[#allocation4 + $0x28] sm:$0xff]   ;;  %v4173_v63 = vld [vmem:[#allocation4 + $0x70] sm:$0xff]  }
 0x232   : > { %v2224_v6 = vrot.slane %v2223_v2, 2  ;;  %2751 = vmatprep.subr.bf16.mxu0 %v4136_v1  ;;  %v4174_v1 = vld [vmem:[#allocation4 + $0x30] sm:$0xff]  }
 0x233   : > { %v2230_v8 = vrot.slane %v2229_v5, 2 }
 0x234   : > { %v2225_v10 = vadd.f32 %v2224_v6, %v2223_v2  ;;  %v4175_v2 = vld [vmem:[#allocation4 + $0x78] sm:$0xff]  }
 0x235   : > { %v2231_v11 = vadd.f32 %v2230_v8, %v2229_v5  ;;  %2752 = vmatpush1.bf16.msra.mxu0 %v4134_v7  ;;  %v4176_v5 = vld [vmem:[#allocation4 + $0x38] sm:$0xff]  }
 0x236   : > { %v2226_v12 = vrot.slane %v2225_v10, 1  ;;  %2753 = vmatprep.subr.bf16.mxu0 %v4139_v9 }
 0x237   : > { %v2232_v14 = vrot.slane %v2231_v11, 1 }
 0x238   : > { %v2227_v17 = vadd.f32 %v2226_v12, %v2225_v10 }
 0x239   : > { %v2233_v18 = vadd.f32 %v2232_v14, %v2231_v11  ;;  %2754 = vmatpush1.bf16.msra.mxu0 %v4137_v13 }
 0x23a   : > { %v2236_v19 = vmul.f32 0.125, %v2227_v17  ;;  %2755 = vmatprep.subr.bf16.mxu0 %v4142_v15 }
 0x23b   : > { %v2237_v21 = vmul.f32 0.125, %v2233_v18 }
 0x23c   : > { %v2240_v27 = vadd.f32 1e-05, %v2236_v19 }
 0x23d   : > { %v2241_v28 = vadd.f32 1e-05, %v2237_v21  ;;  %2756 = vmatpush1.bf16.msra.mxu0 %v4140_v20 }
 0x23e   : > { %4189 = vrsqrt.f32 %v2240_v27  ;;  %2757 = vmatprep.subr.bf16.mxu0 %v4145_v16 }
 0x23f   : > { %4191 = vrsqrt.f32 %v2241_v28 }
 0x241   : > { %2758 = vmatpush1.bf16.msra.mxu0 %v4143_v29 }
 0x242   : > { %2759 = vmatprep.subr.bf16.mxu0 %v4148_v30 }
 0x245   : > { %2760 = vmatpush1.bf16.msra.mxu0 %v4146_v31 }
 0x246   : > { %2761 = vmatprep.subr.bf16.mxu0 %v4151_v32 }
 0x248   : > { %v4190_v36 = vpop.eup %4189 }
 0x249   : > { %v4192_v38 = vpop.eup %4191  ;;  %v2248_v39 = vmul.f32 %v4190_v36, %v2204_v55  ;;  %2762 = vmatpush1.bf16.msra.mxu0 %v4149_v34  ;;  %v4165_v55 = vld [vmem:[#allocation4 + $0x50] sm:$0xff]  }
 0x24a   : > { %v2249_v40 = vmul.f32 %v4192_v38, %v2205_v57  ;;  %2763 = vmatprep.subr.bf16.mxu0 %v4154_v35  ;;  %3612 = vmatprep.subr.bf16.mxu1 %v4165_v55  ;;  %v4167_v57 = vld [vmem:[#allocation4 + $0x58] sm:$0xff]  }
 0x24b   : > { %v2273_v42 = vmul.f32 %v4595_v25, %v2248_v39  ;;  %3613 = vmatpush3.bf16.msra.mxu1 %v4166_v56 }
 0x24c   : > { %v2274_v44 = vmul.f32 %v2266_v37, %v2249_v40  ;;  %3614 = vmatprep.subr.bf16.mxu1 %v4167_v57 }
 0x24d   : > { %v2298_v23 = vadd.f32 %v4598_v26, %v2273_v42  ;;  %2764 = vmatpush1.bf16.msra.mxu0 %v4152_v22 }
 0x24e   : > { %v2299_v47 = vadd.f32 %v2291_v41, %v2274_v44  ;;  %2765 = vmatprep.subr.bf16.mxu0 %v4157_v43 }
 0x24f   : > { %v2302_v25 = vmul.f32 0.01, %v2298_v23  ;;  %3615 = vmatpush3.bf16.msra.mxu1 %v4168_v58 }
 0x250   : > { %v2303_v0 = vmul.f32 0.01, %v2299_v47  ;;  %3616 = vmatprep.subr.bf16.mxu1 %v4169_v59 }
 0x251   : > { %2766 = vmatpush1.bf16.msra.mxu0 %v4155_v46  ;;  %v2306_v26 = vmax.f32 %v2298_v23, %v2302_v25  ;;  %v2779_v25 = vld [vmem:[%s4773_s6] sm:$0x3] }
 0x252   : > { %v2307_v49 = vmax.f32 %v2299_v47, %v2303_v0  ;;  %2767 = vmatprep.subr.bf16.mxu0 %v4160_v24  ;;  %v2778_v24 = vld [vmem:[%s4772_s5] sm:$0x3]  ;;  %v2839_v52 = vrot.slane %v2779_v25, %v4606_v4 }
 0x253   : > { %v2310_v50 = vpack.c.bf16 %v2306_v26, %v2306_v26  ;;  %3617 = vmatpush3.bf16.msra.mxu1 %v4170_v60  ;;  %v2822_v0 = vrot.slane %v2778_v24, %v4603_v3 }
 0x254   : > { %v2311_v45 = vpack.c.bf16 %v2307_v49, %v2307_v49  ;;  %3618 = vmatprep.subr.bf16.mxu1 %v4171_v61  ;;  %v2826_v49 = vrot.slane %v2778_v24, %v4606_v4  ;;  %v4178_v4 = vld [vmem:[%s4777_s10 + $0x8] sm:$0xff]  }
 0x255   : > { %2768 = vmatpush1.bf16.msra.mxu0 %v4158_v48 }
 0x256   : > { %2769 = vmatprep.mubr.bf16.mxu0 %v2311_v45 }
 0x257   : > { %3619 = vmatpush3.bf16.msra.mxu1 %v4172_v62 }
 0x258   : > { %2770 = vmatmul.mubr.bf16.vlgmr.msra.gmra.mrb[4].mxu0 %v2310_v50  ;;  %3620 = vmatprep.subr.bf16.mxu1 %v4173_v63  ;;  %v2835_v50 = vrot.slane %v2779_v25, %v4603_v3  ;;  %v4177_v63 = vld [vmem:[%s4777_s10] sm:$0xff]   ;;  %v4283_v3 = vmov 0.0  }
 0x25b   : > { %3621 = vmatpush3.bf16.msra.mxu1 %v4174_v1  ;;  %v4179_v1 = vld [vmem:[%s4777_s10 + $0x10] sm:$0xff]  }
 0x25c   : > { %3622 = vmatprep.subr.bf16.mxu1 %v4175_v2  ;;  %v4180_v2 = vld [vmem:[%s4777_s10 + $0x18] sm:$0xff]  }
 0x25f   : > { %3623 = vmatpush3.bf16.msra.mxu1 %v4176_v5  ;;  %v4181_v5 = vld [vmem:[%s4777_s10 + $0x20] sm:$0xff]  }
 0x260   : > { %3639 = vmatprep.subr.bf16.mxu1 %v4283_v3 }
 0x32b   : > { %v2771_v6 = vpop.f32.mrb[4].mxu0 }
 0x32c   : > { %v2780_v7 = vrot.slane %v2771_v6, 4  ;;  %v2773_v8 = vpop.f32.mrb[5].mxu0 }
 0x32d   : > { %v2786_v9 = vrot.slane %v2773_v8, 4  ;;  %v2775_v10 = vpop.f32.mrb[6].mxu0 }
 0x32e   : > { %v2781_v11 = vadd.f32 %v2780_v7, %v2771_v6  ;;  %v2776_v12 = vpop.f32.mrb[7].mxu0  ;;  %v4183_v7 = vld [vmem:[%s4777_s10 + $0x30] sm:$0xff]  }
 0x32f   : > { %v2787_v13 = vadd.f32 %v2786_v9, %v2773_v8 }
 0x330   : > { %v2782_v14 = vrot.slane %v2781_v11, 2 }
 0x331   : > { %v2788_v15 = vrot.slane %v2787_v13, 2 }
 0x332   : > { %v2783_v17 = vadd.f32 %v2782_v14, %v2781_v11 }
 0x333   : > { %v2789_v18 = vadd.f32 %v2788_v15, %v2787_v13 }
 0x334   : > { %v2784_v19 = vrot.slane %v2783_v17, 1 }
 0x335   : > { %v2790_v20 = vrot.slane %v2789_v18, 1 }
 0x336   : > { %v2785_v21 = vadd.f32 %v2784_v19, %v2783_v17 }
 0x337   : > { %v2791_v16 = vadd.f32 %v2790_v20, %v2789_v18 }
 0x338   : > { %v2792_v27 = vmul.f32 0.125, %v2785_v21 }
 0x339   : > { %v2793_v28 = vmul.f32 0.125, %v2791_v16 }
 0x33a   : > { %v2794_v29 = vsub.f32 %v2771_v6, %v2792_v27  ;;  %v4182_v6 = vld [vmem:[%s4777_s10 + $0x28] sm:$0xff]  }
 0x33b   : > { %v2795_v30 = vsub.f32 %v2773_v8, %v2793_v28  ;;  %v4184_v8 = vld [vmem:[%s4777_s10 + $0x38] sm:$0xff]  }
 0x33c   : > { %v2796_v31 = vmul.f32 %v2794_v29, %v2794_v29 }
 0x33d   : > { %v2797_v32 = vmul.f32 %v2795_v30, %v2795_v30 }
 0x33e   : > { %v2798_v33 = vrot.slane %v2796_v31, 4 }
 0x33f   : > { %v2804_v34 = vrot.slane %v2797_v32, 4 }
 0x340   : > { %v2799_v35 = vadd.f32 %v2798_v33, %v2796_v31 }
 0x341   : > { %v2805_v36 = vadd.f32 %v2804_v34, %v2797_v32 }
 0x342   : > { %v2800_v37 = vrot.slane %v2799_v35, 2 }
 0x343   : > { %v2806_v38 = vrot.slane %v2805_v36, 2 }
 0x344   : > { %v2801_v39 = vadd.f32 %v2800_v37, %v2799_v35  ;;  %v3594_v37 = vld [vmem:[%s4775_s8] ss:$0 sm:$0xff] }
 0x345   : > { %v2807_v40 = vadd.f32 %v2806_v38, %v2805_v36 }
 0x346   : > { %v2802_v22 = vrot.slane %v2801_v39, 1 }
 0x347   : > { %v2808_v41 = vrot.slane %v2807_v40, 1 }
 0x348   : > { %v2803_v42 = vadd.f32 %v2802_v22, %v2801_v39  ;;  %v3595_v39 = vld [vmem:[%s4776_s9] ss:$0 sm:$0xff] }
 0x349   : > { %v2809_v43 = vadd.f32 %v2808_v41, %v2807_v40 }
 0x34a   : > { %v2810_v44 = vmul.f32 0.125, %v2803_v42 }
 0x34b   : > { %v2811_v23 = vmul.f32 0.125, %v2809_v43 }
 0x34c   : > { %v2812_v46 = vadd.f32 1e-05, %v2810_v44 }
 0x34d   : > { %v2813_v47 = vadd.f32 1e-05, %v2811_v23 }
 0x34e   : > { %4193 = vrsqrt.f32 %v2812_v46 }
 0x34f   : > { %4195 = vrsqrt.f32 %v2813_v47 }
 0x358   : > { %v4194_v48 = vpop.eup %4193 }
 0x359   : > { %v4196_v26 = vpop.eup %4195  ;;  %v2816_v45 = vmul.f32 %v4194_v48, %v2794_v29 }
 0x35a   : > { %v2817_v51 = vmul.f32 %v4196_v26, %v2795_v30 }
 0x35b   : > { %v2829_v53 = vmul.f32 %v2822_v0, %v2816_v45 }
 0x35c   : > { %v2830_v54 = vmul.f32 %v2826_v49, %v2817_v51 }
 0x35d   : > { %v2842_v55 = vadd.f32 %v2835_v50, %v2829_v53 }
 0x35e   : > { %v2843_v56 = vadd.f32 %v2839_v52, %v2830_v54 }
 0x35f   : > { %v2844_v57 = vmul.f32 0.01, %v2842_v55 }
 0x360   : > { %v2845_v58 = vmul.f32 0.01, %v2843_v56 }
 0x361   : > { %v2846_v59 = vmax.f32 %v2842_v55, %v2844_v57 }
 0x362   : > { %v2847_v60 = vmax.f32 %v2843_v56, %v2845_v58 }
 0x363   : > { %v2848_v62 = vpack.c.bf16 %v2846_v59, %v2846_v59 }
 0x364   : > { %v2849_v61 = vpack.c.bf16 %v2847_v60, %v2847_v60 }
 0x366   : > { %3010 = vmatprep.mubr.bf16.mxu1 %v2849_v61  ;;  %v3604_v61 = vld [vmem:[%s4778_s11] ss:$0 sm:$0xff] }
 0x367   : > { %3011 = vmatmul.mubr.bf16.vlgmr.msra.gmra.mrb[8].mxu1 %v2848_v62 }
 0x368   : > { %3640 = vmatpush3.bf16.msra.mxu1 %v4177_v63  ;;  %3655 = vmatprep.mubr.msk.bf16.mxu1 %vm4284_vm0, %v4283_v3  ;;  %v3605_v63 = vld [vmem:[%s4779_s12] ss:$0 sm:$0xff] }
 0x369   : > { %3641 = vmatprep.subr.bf16.mxu1 %v4283_v3 }
 0x36c   : > { %3642 = vmatpush3.bf16.msra.mxu1 %v4178_v4 }
 0x36d   : > { %3643 = vmatprep.subr.bf16.mxu1 %v4283_v3 }
 0x370   : > { %3644 = vmatpush3.bf16.msra.mxu1 %v4179_v1 }
 0x371   : > { %3645 = vmatprep.subr.bf16.mxu1 %v4283_v3 }
 0x374   : > { %3646 = vmatpush3.bf16.msra.mxu1 %v4180_v2 }
 0x375   : > { %3647 = vmatprep.subr.bf16.mxu1 %v4283_v3 }
 0x378   : > { %3648 = vmatpush3.bf16.msra.mxu1 %v4181_v5 }
 0x379   : > { %3649 = vmatprep.subr.bf16.mxu1 %v4283_v3 }
 0x37c   : > { %3650 = vmatpush3.bf16.msra.mxu1 %v4182_v6 }
 0x37d   : > { %3651 = vmatprep.subr.bf16.mxu1 %v4283_v3 }
 0x380   : > { %3652 = vmatpush3.bf16.msra.mxu1 %v4183_v7 }
 0x381   : > { %3653 = vmatprep.subr.bf16.mxu1 %v4283_v3 }
 0x384   : > { %3654 = vmatpush3.bf16.msra.mxu1 %v4184_v8 }
 0x43a   : > { %v3624_v9 = vpop.f32.mrb[8].mxu1 }
 0x43b   : > { %v3625_v10 = vpop.f32.mrb[9].mxu1 }
 0x43c   : > { %v3626_v11 = vadd.f32 %v3625_v10, %v3624_v9  ;;  %v3627_v12 = vpop.f32.mrb[10].mxu1 }
 0x43d   : > { %v3628_v13 = vpop.f32.mrb[11].mxu1 }
 0x43e   : > { %v3020_v14 = vrot.slane %v3626_v11, 4 }
 0x440   : > { %v3021_v15 = vadd.f32 %v3626_v11, %v3020_v14 }
 0x442   : > { %v3022_v17 = vrot.slane %v3021_v15, 2 }
 0x444   : > { %v3023_v18 = vadd.f32 %v3022_v17, %v3021_v15 }
 0x446   : > { %v3024_v19 = vrot.slane %v3023_v18, 1 }
 0x448   : > { %v3025_v20 = vadd.f32 %v3024_v19, %v3023_v18 }
 0x44a   : > { %v3026_v21 = vmul.f32 0.125, %v3025_v20 }
 0x44c   : > { %v3027_v16 = vsub.f32 %v3626_v11, %v3026_v21 }
 0x44e   : > { %v3028_v27 = vmul.f32 %v3027_v16, %v3027_v16 }
 0x450   : > { %v3029_v28 = vrot.slane %v3028_v27, 4 }
 0x452   : > { %v3030_v29 = vadd.f32 %v3029_v28, %v3028_v27 }
 0x454   : > { %v3031_v30 = vrot.slane %v3030_v29, 2 }
 0x456   : > { %v3032_v31 = vadd.f32 %v3031_v30, %v3030_v29 }
 0x458   : > { %v3033_v32 = vrot.slane %v3032_v31, 1 }
 0x45a   : > { %v3034_v33 = vadd.f32 %v3033_v32, %v3032_v31 }
 0x45c   : > { %v3035_v34 = vmul.f32 0.125, %v3034_v33 }
 0x45e   : > { %v3036_v35 = vadd.f32 1e-05, %v3035_v34 }
 0x460   : > { %4197 = vrsqrt.f32 %v3036_v35 }
 0x46a   : > { %v4198_v36 = vpop.eup %4197 }
 0x46b   : > { %v3038_v38 = vmul.f32 %v4198_v36, %v3027_v16 }
 0x46d   : > { %v3045_v40 = vmul.f32 %v3594_v37, %v3038_v38 }
 0x46f   : > { %v3052_v22 = vadd.f32 %v3595_v39, %v3045_v40 }
 0x471   : > { %v3053_v41 = vmul.f32 0.01, %v3052_v22 }
 0x473   : > { %v3054_v42 = vmax.f32 %v3052_v22, %v3053_v41 }
 0x475   : > { %v3055_v43 = vpack.c.bf16 %v3054_v42, %v3054_v42 }
 0x477   : > { %3656 = vmatmul.mubr.bf16.vlgmr.msra.gmra.mrb[12].mxu1 %v3055_v43 }
 0x54a   : > { %v3154_v44 = vpop.f32.mrb[12].mxu1 }
 0x54b   : > { %v3162_v23 = vrot.slane %v3154_v44, 4  ;;  %v3657_v46 = vpop.f32.mrb[13].mxu1 }
 0x54c   : > { %v3157_v47 = vpop.f32.mrb[14].mxu1 }
 0x54d   : > { %v3163_v24 = vadd.f32 %v3162_v23, %v3154_v44  ;;  %v3658_v25 = vpop.f32.mrb[15].mxu1 }
 0x54f   : > { %v3164_v0 = vrot.slane %v3163_v24, 2 }
 0x551   : > { %v3165_v48 = vadd.f32 %v3164_v0, %v3163_v24 }
 0x553   : > { %v3166_v49 = vrot.slane %v3165_v48, 1 }
 0x555   : > { %v3167_v26 = vadd.f32 %v3166_v49, %v3165_v48 }
 0x557   : > { %v3168_v45 = vmul.f32 0.125, %v3167_v26 }
 0x559   : > { %v3169_v50 = vsub.f32 %v3154_v44, %v3168_v45 }
 0x55b   : > { %v3170_v51 = vmul.f32 %v3169_v50, %v3169_v50 }
 0x55d   : > { %v3171_v52 = vrot.slane %v3170_v51, 4 }
 0x55f   : > { %v3172_v53 = vadd.f32 %v3171_v52, %v3170_v51 }
 0x561   : > { %v3173_v54 = vrot.slane %v3172_v53, 2 }
 0x563   : > { %v3174_v55 = vadd.f32 %v3173_v54, %v3172_v53 }
 0x565   : > { %v3175_v56 = vrot.slane %v3174_v55, 1 }
 0x567   : > { %v3176_v57 = vadd.f32 %v3175_v56, %v3174_v55 }
 0x569   : > { %v3177_v58 = vmul.f32 0.125, %v3176_v57 }
 0x56b   : > { %v3178_v59 = vadd.f32 1e-05, %v3177_v58 }
 0x56d   : > { %4199 = vrsqrt.f32 %v3178_v59 }
 0x577   : > { %v4200_v60 = vpop.eup %4199 }
 0x578   : > { %v3180_v62 = vmul.f32 %v4200_v60, %v3169_v50 }
 0x57a   : > { %v3187_v3 = vmul.f32 %v3604_v61, %v3180_v62 }
 0x57c   : > { %v3194_v4 = vadd.f32 %v3605_v63, %v3187_v3 }
 0x57e   : > { %4201 = vtanh.f32 %v3194_v4 }
 0x588   : > { %v4202_v1 = vpop.eup %4201 }
 0x589   : > { %3196 = vst [vmem:[%s468_s15] sm:$0xff] %v4202_v1 }
 0x58a PF: > { %s25_s25 = sadd.s32 1, %s4274_s25  }
 0x58b   : > { %p22_p9 = scmp.ge.s32.totalorder %s25_s25, 6  }
 0x58d   :  { %24 = sbr.rel (!%p22_p9) target bundleno = 2 (0x2), region = 111 }
 0x594   :  { %3216 = vsyncpa [#allocation3], 1 }
 0x595   :  { %3218 = vsyncpa [#allocation3 + $0x1], 1 }
 0x596   :  { %3219 = vsyncpa [#allocation5], 1 }

</bundles_post_ra>
